<compile_context>
chip_gen: v5e
topology: v5e:2x2
jax: 0.10.0
libtpu: 0.0.40
codegen_flags: <defaults>
</compile_context>

<pallas_src>
import functools

import jax
import jax.numpy as jnp
from jax import lax
from jax.experimental import pallas as pl
from jax.experimental.pallas import tpu as pltpu

HIGHEST = jax.lax.Precision.HIGHEST
_TAPS = [(dy, dx) for dy in range(3) for dx in range(3)]


# ----------------------------------------------------------------------------
# Fused forward kernel factory: `nb` images per grid step (nb in {1, B}).
# ----------------------------------------------------------------------------
def _make_kernel(nb):
    f32 = jnp.float32

    def kernel(p1_ref, w1_ref, w2_ref, w3_ref, wfc_ref, b_ref, out_ref,
               act1_sc, xpad2_sc, act2_sc, xpad3_sc, act3_sc):
        # Scratch persists across grid steps (and is per-core under "parallel"),
        # so halo borders must be (re)zeroed every step -- but only the thin
        # 1-pixel strips, not the whole buffers.
        xpad2_sc[:, 0:1, :, :] = jnp.zeros((nb, 1, 10, 32), f32)
        xpad2_sc[:, 9:10, :, :] = jnp.zeros((nb, 1, 10, 32), f32)
        xpad2_sc[:, :, 0:1, :] = jnp.zeros((nb, 10, 1, 32), f32)
        xpad2_sc[:, :, 9:10, :] = jnp.zeros((nb, 10, 1, 32), f32)
        xpad3_sc[:, 0:1, :, :] = jnp.zeros((nb, 1, 6, 64), f32)
        xpad3_sc[:, 5:6, :, :] = jnp.zeros((nb, 1, 6, 64), f32)
        xpad3_sc[:, :, 0:1, :] = jnp.zeros((nb, 6, 1, 64), f32)
        xpad3_sc[:, :, 5:6, :] = jnp.zeros((nb, 6, 1, 64), f32)

        def pool2x2(act_sc, ho, wo):
            # 2x2/2 max-pool via strided VMEM reads of the pre-pool activation.
            a = act_sc[:, pl.ds(0, ho, stride=2), pl.ds(0, wo, stride=2), :]
            b = act_sc[:, pl.ds(0, ho, stride=2), pl.ds(1, wo, stride=2), :]
            c = act_sc[:, pl.ds(1, ho, stride=2), pl.ds(0, wo, stride=2), :]
            d = act_sc[:, pl.ds(1, ho, stride=2), pl.ds(1, wo, stride=2), :]
            return jnp.maximum(jnp.maximum(a, b), jnp.maximum(c, d))

        def conv3x3(src_ref, h, w, cin, cout, w_ref):
            # 9 accumulating tap matmuls.  Weight row slices are sublane-aligned
            # (multiples of 32/64) -> no patch scratch, no masked lane-offset
            # stores; the MXU (idle anyway) absorbs the extra pushes.
            m = nb * h * w
            acc = jnp.zeros((m, cout), f32)
            for t, (dy, dx) in enumerate(_TAPS):
                tap = src_ref[:, dy:dy + h, dx:dx + w, :].reshape(m, cin)
                acc = acc + jnp.dot(tap, w_ref[t * cin:(t + 1) * cin, :],
                                    preferred_element_type=f32)
            return acc

        # ---- Block 1: conv(3->32) as ONE K=27 matmul on the im2col slab -----
        # (BN scale already folded into the weights; bias + ReLU in-kernel.)
        a1 = jnp.dot(p1_ref[...], w1_ref[...], preferred_element_type=f32)
        a1 = jnp.maximum(a1 + b_ref[0:1, 0:32], 0.0)            # (nb*256, 32)
        act1_sc[...] = a1.reshape(nb, 16, 16, 32)
        xpad2_sc[:, 1:9, 1:9, :] = pool2x2(act1_sc, 8, 8)       # (nb,8,8,32)

        # ---- Block 2: conv(32->64) as 9 accumulating K=32 matmuls -----------
        a2 = conv3x3(xpad2_sc, 8, 8, 32, 64, w2_ref)
        a2 = jnp.maximum(a2 + b_ref[1:2, 0:64], 0.0)            # (nb*64, 64)
        act2_sc[...] = a2.reshape(nb, 8, 8, 64)
        xpad3_sc[:, 1:5, 1:5, :] = pool2x2(act2_sc, 4, 4)       # (nb,4,4,64)

        # ---- Block 3: conv(64->128) as 9 accumulating K=64 matmuls ----------
        a3 = conv3x3(xpad3_sc, 4, 4, 64, 128, w3_ref)
        a3 = jnp.maximum(a3 + b_ref[2:3, :], 0.0)               # (nb*16, 128)
        act3_sc[...] = a3.reshape(nb, 4, 4, 128)
        p3 = pool2x2(act3_sc, 2, 2)                             # (nb,2,2,128)

        # ---- GAP + Linear(128 -> 2), lane-dense (padded to 128 outputs) -----
        gap = (p3[:, 0, 0, :] + p3[:, 0, 1, :]
               + p3[:, 1, 0, :] + p3[:, 1, 1, :]) * 0.25        # (nb, 128)
        logits = jnp.dot(gap, wfc_ref[...], preferred_element_type=f32)
        out_ref[...] = (logits + b_ref[3:4, :]).reshape(nb, 1, 128)

    return kernel


# ----------------------------------------------------------------------------
# Wrapper
# ----------------------------------------------------------------------------
def _im2col_3x3(x):
    """(B, 16, 16, 3) NHWC -> (B*256, 27) patches for a 3x3 'same' conv."""
    B, H, W, C = x.shape
    xp = jnp.pad(x, ((0, 0), (1, 1), (1, 1), (0, 0)))
    cols = [xp[:, dy:dy + H, dx:dx + W, :] for dy, dx in _TAPS]
    return jnp.concatenate(cols, axis=-1).reshape(B * H * W, 9 * C)


def water_pollution_cnn(x_nchw, packed, *, images_per_step=1):
    x = jnp.transpose(x_nchw, (0, 2, 3, 1)).astype(jnp.float32)   # NCHW -> NHWC
    B, H, W, Cin = x.shape
    assert (H, W, Cin) == (16, 16, 3), (H, W, Cin)
    nb = images_per_step
    assert B % nb == 0
    steps = B // nb
    p1 = _im2col_3x3(x)                                           # (B*256, 27)

    const2 = lambda i: (0, 0)
    flops = 2 * B * (256 * 27 * 32 + 64 * 288 * 64 + 16 * 576 * 128 + 128 * 128)
    nbytes = 4 * (p1.size + packed["w1"].size + packed["w2"].size
                  + packed["w3"].size + packed["wfc"].size + packed["b"].size
                  + B * 128)

    out = pl.pallas_call(
        _make_kernel(nb),
        out_shape=jax.ShapeDtypeStruct((B, 1, 128), jnp.float32),
        grid=(steps,),
        in_specs=[
            pl.BlockSpec((nb * 256, 27), lambda i: (i, 0)),   # block-1 im2col slab
            pl.BlockSpec((27, 32), const2),                   # w1 (BN1 scale folded)
            pl.BlockSpec((288, 64), const2),                  # w2 (BN2 scale folded)
            pl.BlockSpec((576, 128), const2),                 # w3 (BN3 scale folded)
            pl.BlockSpec((128, 128), const2),                 # fc weight, lane-padded
            pl.BlockSpec((4, 128), const2),                   # packed biases
        ],
        out_specs=pl.BlockSpec((nb, 1, 128), lambda i: (i, 0, 0)),
        scratch_shapes=[
            pltpu.VMEM((nb, 16, 16, 32), jnp.float32),   # block-1 pre-pool act
            pltpu.VMEM((nb, 10, 10, 32), jnp.float32),   # zero-bordered input of blk 2
            pltpu.VMEM((nb, 8, 8, 64), jnp.float32),     # block-2 pre-pool act
            pltpu.VMEM((nb, 6, 6, 64), jnp.float32),     # zero-bordered input of blk 3
            pltpu.VMEM((nb, 4, 4, 128), jnp.float32),    # block-3 pre-pool act
        ],
        compiler_params=pltpu.CompilerParams(
            dimension_semantics=("parallel",) if nb == 1 else ("arbitrary",)),
        cost_estimate=pl.CostEstimate(flops=flops, transcendentals=0,
                                      bytes_accessed=nbytes),
    )(p1, packed["w1"], packed["w2"], packed["w3"], packed["wfc"], packed["b"])
    return out.reshape(B, 128)[:, :2]


def _images_per_step(batch):
    """Fold the whole batch into one grid step on single-TensorCore chips
    (v5e/v6e); keep one image per step elsewhere (v7x: batch shards across the
    2 TensorCores via dimension_semantics=('parallel',))."""
    try:
        kind = jax.devices()[0].device_kind.lower()
    except Exception:
        return 1
    single_tc = any(t in kind for t in
                    ("v5e", "v5 lite", "v5lite", "v6e", "v6 lite", "v6lite"))
    return batch if single_tc else 1


# ----------------------------------------------------------------------------
# Parameters: raw (module-like) params + offline packing for the kernel.
# ----------------------------------------------------------------------------
def init_params(key):
    # TODO(synk): BatchNorm uses eval-mode running statistics (folded into an
    # affine scale/bias); training-mode per-batch statistics are not implemented.
    eps = 1e-5
    channels = [(3, 32), (32, 64), (64, 128)]
    keys = jax.random.split(key, 3 * len(channels) + 2)
    blocks = []
    for i, (cin, cout) in enumerate(channels):
        kw, kg, kb = keys[3 * i], keys[3 * i + 1], keys[3 * i + 2]
        # PyTorch conv weight is (Cout, Cin, 3, 3); permute to HWIO.
        w_oihw = 0.1 * jax.random.normal(kw, (cout, cin, 3, 3), jnp.float32)
        w_hwio = jnp.transpose(w_oihw, (2, 3, 1, 0))              # (3,3,Cin,Cout)
        gamma = 1.0 + 0.1 * jax.random.normal(kg, (cout,), jnp.float32)
        beta = 0.1 * jax.random.normal(kb, (cout,), jnp.float32)
        running_mean = jnp.zeros((cout,), jnp.float32)
        running_var = jnp.ones((cout,), jnp.float32)
        scale = gamma / jnp.sqrt(running_var + eps)
        bias = beta - running_mean * scale
        blocks.append((w_hwio, scale, bias))
    kfw, kfb = keys[-2], keys[-1]
    # PyTorch Linear weight is (2, 128); store its transpose (128, 2).
    wfc = 0.1 * jax.random.normal(kfw, (128, 2), jnp.float32)
    bfc = 0.01 * jax.random.normal(kfb, (2,), jnp.float32)
    return {"blocks": blocks, "wfc": wfc, "bfc": bfc}


def pack_params(params):
    """Offline: fold BN scale into conv weights, pad FC weight to lane-dense
    (128,128), coalesce all biases into one (4,128) array."""
    names = ("w1", "w2", "w3")
    packed, biases = {}, []
    for name, (w_hwio, scale, bias) in zip(names, params["blocks"]):
        cin, cout = w_hwio.shape[2], w_hwio.shape[3]
        packed[name] = (w_hwio * scale).reshape(9 * cin, cout)   # rows = (dy,dx,cin)
        biases.append(jnp.pad(bias, (0, 128 - cout)))
    packed["wfc"] = jnp.zeros((128, 128), jnp.float32).at[:, :2].set(params["wfc"])
    biases.append(jnp.pad(params["bfc"], (0, 126)))
    packed["b"] = jnp.stack(biases)                               # (4, 128)
    return packed


# ----------------------------------------------------------------------------
# Pure-JAX reference (full f32, correctness check only).
# ----------------------------------------------------------------------------
def reference_forward(x_nchw, params):
    x = jnp.transpose(x_nchw, (0, 2, 3, 1)).astype(jnp.float32)
    for (w_hwio, scale, bias) in params["blocks"]:
        y = lax.conv_general_dilated(
            x, w_hwio, window_strides=(1, 1), padding="SAME",
            dimension_numbers=("NHWC", "HWIO", "NHWC"), precision=HIGHEST)
        y = jnp.maximum(y * scale + bias, 0.0)
        y = lax.reduce_window(y, -jnp.inf, lax.max,
                              (1, 2, 2, 1), (1, 2, 2, 1), "VALID")
        x = y
    gap = jnp.mean(x, axis=(1, 2))
    return jnp.dot(gap, params["wfc"], precision=HIGHEST) + params["bfc"]


if __name__ == "__main__":
    key = jax.random.PRNGKey(0)
    kp, kx = jax.random.split(key)
    params = init_params(kp)
    packed = pack_params(params)                                  # offline, once
    x = jax.random.normal(kx, (2, 3, 16, 16), jnp.float32)        # NCHW like PyTorch

    nb = _images_per_step(x.shape[0])
    forward = jax.jit(functools.partial(water_pollution_cnn, images_per_step=nb))
    out = jax.block_until_ready(forward(x, packed))
    assert out.shape == (2, 2), out.shape

    ref = jax.block_until_ready(reference_forward(x, params))
    # Kernel matmuls use DEFAULT precision (one bf16 MXU pass, f32 accumulate);
    # the reference is full-f32 HIGHEST, hence the slightly loosened tolerance.
    assert jnp.allclose(out, ref, atol=2e-2, rtol=2e-2), (out, ref)

    print("KERNEL_OK")
</pallas_src>

<mosaic_0001>
module attributes {stable_mosaic.version = 11 : i64} {
  func.func @kernel(%arg0: i32, %arg1: memref<256x27xf32, #tpu.memory_space<vmem>>, %arg2: memref<27x32xf32, #tpu.memory_space<vmem>>, %arg3: memref<288x64xf32, #tpu.memory_space<vmem>>, %arg4: memref<576x128xf32, #tpu.memory_space<vmem>>, %arg5: memref<128x128xf32, #tpu.memory_space<vmem>>, %arg6: memref<4x128xf32, #tpu.memory_space<vmem>>, %arg7: memref<1x1x128xf32, #tpu.memory_space<vmem>>, %arg8: memref<1x16x16x32xf32, #tpu.memory_space<vmem>>, %arg9: memref<1x10x10x32xf32, #tpu.memory_space<vmem>>, %arg10: memref<1x8x8x64xf32, #tpu.memory_space<vmem>>, %arg11: memref<1x6x6x64xf32, #tpu.memory_space<vmem>>, %arg12: memref<1x4x4x128xf32, #tpu.memory_space<vmem>>) attributes {dimension_semantics = [#tpu.dimension_semantics<parallel>], iteration_bounds = array<i64: 2>, scalar_prefetch = 0 : i64, scratch_operands = 5 : i64, tpu.core_type = #tpu.core_type<tc>, window_params = [{transform_indices = @transform_0, window_bounds = array<i64: 256, 27>}, {pipeline_mode = #tpu.pipeline_mode<synchronous>, transform_indices = @transform_1, window_bounds = array<i64: 27, 32>}, {pipeline_mode = #tpu.pipeline_mode<synchronous>, transform_indices = @transform_2, window_bounds = array<i64: 288, 64>}, {pipeline_mode = #tpu.pipeline_mode<synchronous>, transform_indices = @transform_3, window_bounds = array<i64: 576, 128>}, {pipeline_mode = #tpu.pipeline_mode<synchronous>, transform_indices = @transform_4, window_bounds = array<i64: 128, 128>}, {pipeline_mode = #tpu.pipeline_mode<synchronous>, transform_indices = @transform_5, window_bounds = array<i64: 4, 128>}, {transform_indices = @transform_6, window_bounds = array<i64: 1, 1, 128>}]} {
    %cst = arith.constant 0.000000e+00 : f32
    %0 = vector.broadcast %cst : f32 to vector<1x1x10x32xf32>
    %c0 = arith.constant 0 : index
    %c0_0 = arith.constant 0 : index
    %c0_1 = arith.constant 0 : index
    %c0_2 = arith.constant 0 : index
    %1 = vector.load %arg9[%c0, %c0_0, %c0_1, %c0_2] : memref<1x10x10x32xf32, #tpu.memory_space<vmem>>, vector<1x1x10x32xf32>
    tpu.vector_store %arg9[%c0, %c0_0, %c0_1, %c0_2], %0 {strides = array<i32>} : memref<1x10x10x32xf32, #tpu.memory_space<vmem>>, vector<1x1x10x32xf32>,
    %cst_3 = arith.constant 0.000000e+00 : f32
    %2 = vector.broadcast %cst_3 : f32 to vector<1x1x10x32xf32>
    %c0_4 = arith.constant 0 : index
    %c9 = arith.constant 9 : index
    %c0_5 = arith.constant 0 : index
    %c0_6 = arith.constant 0 : index
    %3 = vector.load %arg9[%c0_4, %c9, %c0_5, %c0_6] : memref<1x10x10x32xf32, #tpu.memory_space<vmem>>, vector<1x1x10x32xf32>
    tpu.vector_store %arg9[%c0_4, %c9, %c0_5, %c0_6], %2 {strides = array<i32>} : memref<1x10x10x32xf32, #tpu.memory_space<vmem>>, vector<1x1x10x32xf32>,
    %cst_7 = arith.constant 0.000000e+00 : f32
    %4 = vector.broadcast %cst_7 : f32 to vector<1x10x1x32xf32>
    %c0_8 = arith.constant 0 : index
    %c0_9 = arith.constant 0 : index
    %c0_10 = arith.constant 0 : index
    %c0_11 = arith.constant 0 : index
    %5 = vector.load %arg9[%c0_8, %c0_9, %c0_10, %c0_11] : memref<1x10x10x32xf32, #tpu.memory_space<vmem>>, vector<1x10x1x32xf32>
    tpu.vector_store %arg9[%c0_8, %c0_9, %c0_10, %c0_11], %4 {strides = array<i32>} : memref<1x10x10x32xf32, #tpu.memory_space<vmem>>, vector<1x10x1x32xf32>,
    %cst_12 = arith.constant 0.000000e+00 : f32
    %6 = vector.broadcast %cst_12 : f32 to vector<1x10x1x32xf32>
    %c0_13 = arith.constant 0 : index
    %c0_14 = arith.constant 0 : index
    %c9_15 = arith.constant 9 : index
    %c0_16 = arith.constant 0 : index
    %7 = vector.load %arg9[%c0_13, %c0_14, %c9_15, %c0_16] : memref<1x10x10x32xf32, #tpu.memory_space<vmem>>, vector<1x10x1x32xf32>
    tpu.vector_store %arg9[%c0_13, %c0_14, %c9_15, %c0_16], %6 {strides = array<i32>} : memref<1x10x10x32xf32, #tpu.memory_space<vmem>>, vector<1x10x1x32xf32>,
    %cst_17 = arith.constant 0.000000e+00 : f32
    %8 = vector.broadcast %cst_17 : f32 to vector<1x1x6x64xf32>
    %c0_18 = arith.constant 0 : index
    %c0_19 = arith.constant 0 : index
    %c0_20 = arith.constant 0 : index
    %c0_21 = arith.constant 0 : index
    %9 = vector.load %arg11[%c0_18, %c0_19, %c0_20, %c0_21] : memref<1x6x6x64xf32, #tpu.memory_space<vmem>>, vector<1x1x6x64xf32>
    tpu.vector_store %arg11[%c0_18, %c0_19, %c0_20, %c0_21], %8 {strides = array<i32>} : memref<1x6x6x64xf32, #tpu.memory_space<vmem>>, vector<1x1x6x64xf32>,
    %cst_22 = arith.constant 0.000000e+00 : f32
    %10 = vector.broadcast %cst_22 : f32 to vector<1x1x6x64xf32>
    %c0_23 = arith.constant 0 : index
    %c5 = arith.constant 5 : index
    %c0_24 = arith.constant 0 : index
    %c0_25 = arith.constant 0 : index
    %11 = vector.load %arg11[%c0_23, %c5, %c0_24, %c0_25] : memref<1x6x6x64xf32, #tpu.memory_space<vmem>>, vector<1x1x6x64xf32>
    tpu.vector_store %arg11[%c0_23, %c5, %c0_24, %c0_25], %10 {strides = array<i32>} : memref<1x6x6x64xf32, #tpu.memory_space<vmem>>, vector<1x1x6x64xf32>,
    %cst_26 = arith.constant 0.000000e+00 : f32
    %12 = vector.broadcast %cst_26 : f32 to vector<1x6x1x64xf32>
    %c0_27 = arith.constant 0 : index
    %c0_28 = arith.constant 0 : index
    %c0_29 = arith.constant 0 : index
    %c0_30 = arith.constant 0 : index
    %13 = vector.load %arg11[%c0_27, %c0_28, %c0_29, %c0_30] : memref<1x6x6x64xf32, #tpu.memory_space<vmem>>, vector<1x6x1x64xf32>
    tpu.vector_store %arg11[%c0_27, %c0_28, %c0_29, %c0_30], %12 {strides = array<i32>} : memref<1x6x6x64xf32, #tpu.memory_space<vmem>>, vector<1x6x1x64xf32>,
    %cst_31 = arith.constant 0.000000e+00 : f32
    %14 = vector.broadcast %cst_31 : f32 to vector<1x6x1x64xf32>
    %c0_32 = arith.constant 0 : index
    %c0_33 = arith.constant 0 : index
    %c5_34 = arith.constant 5 : index
    %c0_35 = arith.constant 0 : index
    %15 = vector.load %arg11[%c0_32, %c0_33, %c5_34, %c0_35] : memref<1x6x6x64xf32, #tpu.memory_space<vmem>>, vector<1x6x1x64xf32>
    tpu.vector_store %arg11[%c0_32, %c0_33, %c5_34, %c0_35], %14 {strides = array<i32>} : memref<1x6x6x64xf32, #tpu.memory_space<vmem>>, vector<1x6x1x64xf32>,
    %c0_36 = arith.constant 0 : index
    %c0_37 = arith.constant 0 : index
    %16 = vector.load %arg1[%c0_36, %c0_37] : memref<256x27xf32, #tpu.memory_space<vmem>>, vector<256x27xf32>
    %c0_38 = arith.constant 0 : index
    %c0_39 = arith.constant 0 : index
    %17 = vector.load %arg2[%c0_38, %c0_39] : memref<27x32xf32, #tpu.memory_space<vmem>>, vector<27x32xf32>
    %cst_40 = arith.constant dense<0.000000e+00> : vector<256x32xf32>
    %18 = tpu.matmul %16, %17, %cst_40 {dimension_numbers = #tpu.dot_dimension_numbers<[1], [0], [0], [1], [0, 0, 1, 1], [], []>} : vector<256x27xf32>, vector<27x32xf32>, vector<256x32xf32> -> vector<256x32xf32>
    %c0_41 = arith.constant 0 : index
    %c0_42 = arith.constant 0 : index
    %19 = vector.load %arg6[%c0_41, %c0_42] : memref<4x128xf32, #tpu.memory_space<vmem>>, vector<1x32xf32>
    %20 = vector.broadcast %19 : vector<1x32xf32> to vector<256x32xf32>
    %21 = arith.addf %18, %20 : vector<256x32xf32>
    %cst_43 = arith.constant 0.000000e+00 : f32
    %22 = vector.broadcast %cst_43 : f32 to vector<256x32xf32>
    %23 = arith.maximumf %21, %22 : vector<256x32xf32>
    %24 = vector.shape_cast %23 : vector<256x32xf32> to vector<1x16x16x32xf32>
    %c0_44 = arith.constant 0 : index
    %c0_45 = arith.constant 0 : index
    %c0_46 = arith.constant 0 : index
    %c0_47 = arith.constant 0 : index
    %25 = vector.load %arg8[%c0_44, %c0_45, %c0_46, %c0_47] : memref<1x16x16x32xf32, #tpu.memory_space<vmem>>, vector<1x16x16x32xf32>
    tpu.vector_store %arg8[%c0_44, %c0_45, %c0_46, %c0_47], %24 {strides = array<i32>} : memref<1x16x16x32xf32, #tpu.memory_space<vmem>>, vector<1x16x16x32xf32>,
    %c0_48 = arith.constant 0 : index
    %c0_49 = arith.constant 0 : index
    %c0_50 = arith.constant 0 : index
    %c0_51 = arith.constant 0 : index
    %26 = tpu.strided_load %arg8[%c0_48, %c0_49, %c0_50, %c0_51] {strides = array<i32: 1, 2, 2, 1>} : memref<1x16x16x32xf32, #tpu.memory_space<vmem>>, vector<1x8x8x32xf32>
    %c0_52 = arith.constant 0 : index
    %c0_53 = arith.constant 0 : index
    %c1 = arith.constant 1 : index
    %c0_54 = arith.constant 0 : index
    %27 = tpu.strided_load %arg8[%c0_52, %c0_53, %c1, %c0_54] {strides = array<i32: 1, 2, 2, 1>} : memref<1x16x16x32xf32, #tpu.memory_space<vmem>>, vector<1x8x8x32xf32>
    %c0_55 = arith.constant 0 : index
    %c1_56 = arith.constant 1 : index
    %c0_57 = arith.constant 0 : index
    %c0_58 = arith.constant 0 : index
    %28 = tpu.strided_load %arg8[%c0_55, %c1_56, %c0_57, %c0_58] {strides = array<i32: 1, 2, 2, 1>} : memref<1x16x16x32xf32, #tpu.memory_space<vmem>>, vector<1x8x8x32xf32>
    %c0_59 = arith.constant 0 : index
    %c1_60 = arith.constant 1 : index
    %c1_61 = arith.constant 1 : index
    %c0_62 = arith.constant 0 : index
    %29 = tpu.strided_load %arg8[%c0_59, %c1_60, %c1_61, %c0_62] {strides = array<i32: 1, 2, 2, 1>} : memref<1x16x16x32xf32, #tpu.memory_space<vmem>>, vector<1x8x8x32xf32>
    %30 = arith.maximumf %26, %27 : vector<1x8x8x32xf32>
    %31 = arith.maximumf %28, %29 : vector<1x8x8x32xf32>
    %32 = arith.maximumf %30, %31 : vector<1x8x8x32xf32>
    %c0_63 = arith.constant 0 : index
    %c1_64 = arith.constant 1 : index
    %c1_65 = arith.constant 1 : index
    %c0_66 = arith.constant 0 : index
    %33 = vector.load %arg9[%c0_63, %c1_64, %c1_65, %c0_66] : memref<1x10x10x32xf32, #tpu.memory_space<vmem>>, vector<1x8x8x32xf32>
    tpu.vector_store %arg9[%c0_63, %c1_64, %c1_65, %c0_66], %32 {strides = array<i32>} : memref<1x10x10x32xf32, #tpu.memory_space<vmem>>, vector<1x8x8x32xf32>,
    %cst_67 = arith.constant 0.000000e+00 : f32
    %34 = vector.broadcast %cst_67 : f32 to vector<64x64xf32>
    %c0_68 = arith.constant 0 : index
    %c0_69 = arith.constant 0 : index
    %c0_70 = arith.constant 0 : index
    %c0_71 = arith.constant 0 : index
    %35 = vector.load %arg9[%c0_68, %c0_69, %c0_70, %c0_71] : memref<1x10x10x32xf32, #tpu.memory_space<vmem>>, vector<1x8x8x32xf32>
    %36 = vector.shape_cast %35 : vector<1x8x8x32xf32> to vector<64x32xf32>
    %c0_72 = arith.constant 0 : index
    %c0_73 = arith.constant 0 : index
    %37 = vector.load %arg3[%c0_72, %c0_73] : memref<288x64xf32, #tpu.memory_space<vmem>>, vector<32x64xf32>
    %cst_74 = arith.constant dense<0.000000e+00> : vector<64x64xf32>
    %38 = tpu.matmul %36, %37, %cst_74 {dimension_numbers = #tpu.dot_dimension_numbers<[1], [0], [0], [1], [0, 0, 1, 1], [], []>} : vector<64x32xf32>, vector<32x64xf32>, vector<64x64xf32> -> vector<64x64xf32>
    %39 = arith.addf %34, %38 : vector<64x64xf32>
    %c0_75 = arith.constant 0 : index
    %c0_76 = arith.constant 0 : index
    %c1_77 = arith.constant 1 : index
    %c0_78 = arith.constant 0 : index
    %40 = vector.load %arg9[%c0_75, %c0_76, %c1_77, %c0_78] : memref<1x10x10x32xf32, #tpu.memory_space<vmem>>, vector<1x8x8x32xf32>
    %41 = vector.shape_cast %40 : vector<1x8x8x32xf32> to vector<64x32xf32>
    %c32 = arith.constant 32 : index
    %c0_79 = arith.constant 0 : index
    %42 = vector.load %arg3[%c32, %c0_79] : memref<288x64xf32, #tpu.memory_space<vmem>>, vector<32x64xf32>
    %cst_80 = arith.constant dense<0.000000e+00> : vector<64x64xf32>
    %43 = tpu.matmul %41, %42, %cst_80 {dimension_numbers = #tpu.dot_dimension_numbers<[1], [0], [0], [1], [0, 0, 1, 1], [], []>} : vector<64x32xf32>, vector<32x64xf32>, vector<64x64xf32> -> vector<64x64xf32>
    %44 = arith.addf %39, %43 : vector<64x64xf32>
    %c0_81 = arith.constant 0 : index
    %c0_82 = arith.constant 0 : index
    %c2 = arith.constant 2 : index
    %c0_83 = arith.constant 0 : index
    %45 = vector.load %arg9[%c0_81, %c0_82, %c2, %c0_83] : memref<1x10x10x32xf32, #tpu.memory_space<vmem>>, vector<1x8x8x32xf32>
    %46 = vector.shape_cast %45 : vector<1x8x8x32xf32> to vector<64x32xf32>
    %c64 = arith.constant 64 : index
    %c0_84 = arith.constant 0 : index
    %47 = vector.load %arg3[%c64, %c0_84] : memref<288x64xf32, #tpu.memory_space<vmem>>, vector<32x64xf32>
    %cst_85 = arith.constant dense<0.000000e+00> : vector<64x64xf32>
    %48 = tpu.matmul %46, %47, %cst_85 {dimension_numbers = #tpu.dot_dimension_numbers<[1], [0], [0], [1], [0, 0, 1, 1], [], []>} : vector<64x32xf32>, vector<32x64xf32>, vector<64x64xf32> -> vector<64x64xf32>
    %49 = arith.addf %44, %48 : vector<64x64xf32>
    %c0_86 = arith.constant 0 : index
    %c1_87 = arith.constant 1 : index
    %c0_88 = arith.constant 0 : index
    %c0_89 = arith.constant 0 : index
    %50 = vector.load %arg9[%c0_86, %c1_87, %c0_88, %c0_89] : memref<1x10x10x32xf32, #tpu.memory_space<vmem>>, vector<1x8x8x32xf32>
    %51 = vector.shape_cast %50 : vector<1x8x8x32xf32> to vector<64x32xf32>
    %c96 = arith.constant 96 : index
    %c0_90 = arith.constant 0 : index
    %52 = vector.load %arg3[%c96, %c0_90] : memref<288x64xf32, #tpu.memory_space<vmem>>, vector<32x64xf32>
    %cst_91 = arith.constant dense<0.000000e+00> : vector<64x64xf32>
    %53 = tpu.matmul %51, %52, %cst_91 {dimension_numbers = #tpu.dot_dimension_numbers<[1], [0], [0], [1], [0, 0, 1, 1], [], []>} : vector<64x32xf32>, vector<32x64xf32>, vector<64x64xf32> -> vector<64x64xf32>
    %54 = arith.addf %49, %53 : vector<64x64xf32>
    %c0_92 = arith.constant 0 : index
    %c1_93 = arith.constant 1 : index
    %c1_94 = arith.constant 1 : index
    %c0_95 = arith.constant 0 : index
    %55 = vector.load %arg9[%c0_92, %c1_93, %c1_94, %c0_95] : memref<1x10x10x32xf32, #tpu.memory_space<vmem>>, vector<1x8x8x32xf32>
    %56 = vector.shape_cast %55 : vector<1x8x8x32xf32> to vector<64x32xf32>
    %c128 = arith.constant 128 : index
    %c0_96 = arith.constant 0 : index
    %57 = vector.load %arg3[%c128, %c0_96] : memref<288x64xf32, #tpu.memory_space<vmem>>, vector<32x64xf32>
    %cst_97 = arith.constant dense<0.000000e+00> : vector<64x64xf32>
    %58 = tpu.matmul %56, %57, %cst_97 {dimension_numbers = #tpu.dot_dimension_numbers<[1], [0], [0], [1], [0, 0, 1, 1], [], []>} : vector<64x32xf32>, vector<32x64xf32>, vector<64x64xf32> -> vector<64x64xf32>
    %59 = arith.addf %54, %58 : vector<64x64xf32>
    %c0_98 = arith.constant 0 : index
    %c1_99 = arith.constant 1 : index
    %c2_100 = arith.constant 2 : index
    %c0_101 = arith.constant 0 : index
    %60 = vector.load %arg9[%c0_98, %c1_99, %c2_100, %c0_101] : memref<1x10x10x32xf32, #tpu.memory_space<vmem>>, vector<1x8x8x32xf32>
    %61 = vector.shape_cast %60 : vector<1x8x8x32xf32> to vector<64x32xf32>
    %c160 = arith.constant 160 : index
    %c0_102 = arith.constant 0 : index
    %62 = vector.load %arg3[%c160, %c0_102] : memref<288x64xf32, #tpu.memory_space<vmem>>, vector<32x64xf32>
    %cst_103 = arith.constant dense<0.000000e+00> : vector<64x64xf32>
    %63 = tpu.matmul %61, %62, %cst_103 {dimension_numbers = #tpu.dot_dimension_numbers<[1], [0], [0], [1], [0, 0, 1, 1], [], []>} : vector<64x32xf32>, vector<32x64xf32>, vector<64x64xf32> -> vector<64x64xf32>
    %64 = arith.addf %59, %63 : vector<64x64xf32>
    %c0_104 = arith.constant 0 : index
    %c2_105 = arith.constant 2 : index
    %c0_106 = arith.constant 0 : index
    %c0_107 = arith.constant 0 : index
    %65 = vector.load %arg9[%c0_104, %c2_105, %c0_106, %c0_107] : memref<1x10x10x32xf32, #tpu.memory_space<vmem>>, vector<1x8x8x32xf32>
    %66 = vector.shape_cast %65 : vector<1x8x8x32xf32> to vector<64x32xf32>
    %c192 = arith.constant 192 : index
    %c0_108 = arith.constant 0 : index
    %67 = vector.load %arg3[%c192, %c0_108] : memref<288x64xf32, #tpu.memory_space<vmem>>, vector<32x64xf32>
    %cst_109 = arith.constant dense<0.000000e+00> : vector<64x64xf32>
    %68 = tpu.matmul %66, %67, %cst_109 {dimension_numbers = #tpu.dot_dimension_numbers<[1], [0], [0], [1], [0, 0, 1, 1], [], []>} : vector<64x32xf32>, vector<32x64xf32>, vector<64x64xf32> -> vector<64x64xf32>
    %69 = arith.addf %64, %68 : vector<64x64xf32>
    %c0_110 = arith.constant 0 : index
    %c2_111 = arith.constant 2 : index
    %c1_112 = arith.constant 1 : index
    %c0_113 = arith.constant 0 : index
    %70 = vector.load %arg9[%c0_110, %c2_111, %c1_112, %c0_113] : memref<1x10x10x32xf32, #tpu.memory_space<vmem>>, vector<1x8x8x32xf32>
    %71 = vector.shape_cast %70 : vector<1x8x8x32xf32> to vector<64x32xf32>
    %c224 = arith.constant 224 : index
    %c0_114 = arith.constant 0 : index
    %72 = vector.load %arg3[%c224, %c0_114] : memref<288x64xf32, #tpu.memory_space<vmem>>, vector<32x64xf32>
    %cst_115 = arith.constant dense<0.000000e+00> : vector<64x64xf32>
    %73 = tpu.matmul %71, %72, %cst_115 {dimension_numbers = #tpu.dot_dimension_numbers<[1], [0], [0], [1], [0, 0, 1, 1], [], []>} : vector<64x32xf32>, vector<32x64xf32>, vector<64x64xf32> -> vector<64x64xf32>
    %74 = arith.addf %69, %73 : vector<64x64xf32>
    %c0_116 = arith.constant 0 : index
    %c2_117 = arith.constant 2 : index
    %c2_118 = arith.constant 2 : index
    %c0_119 = arith.constant 0 : index
    %75 = vector.load %arg9[%c0_116, %c2_117, %c2_118, %c0_119] : memref<1x10x10x32xf32, #tpu.memory_space<vmem>>, vector<1x8x8x32xf32>
    %76 = vector.shape_cast %75 : vector<1x8x8x32xf32> to vector<64x32xf32>
    %c256 = arith.constant 256 : index
    %c0_120 = arith.constant 0 : index
    %77 = vector.load %arg3[%c256, %c0_120] : memref<288x64xf32, #tpu.memory_space<vmem>>, vector<32x64xf32>
    %cst_121 = arith.constant dense<0.000000e+00> : vector<64x64xf32>
    %78 = tpu.matmul %76, %77, %cst_121 {dimension_numbers = #tpu.dot_dimension_numbers<[1], [0], [0], [1], [0, 0, 1, 1], [], []>} : vector<64x32xf32>, vector<32x64xf32>, vector<64x64xf32> -> vector<64x64xf32>
    %79 = arith.addf %74, %78 : vector<64x64xf32>
    %c1_122 = arith.constant 1 : index
    %c0_123 = arith.constant 0 : index
    %80 = vector.load %arg6[%c1_122, %c0_123] : memref<4x128xf32, #tpu.memory_space<vmem>>, vector<1x64xf32>
    %81 = vector.broadcast %80 : vector<1x64xf32> to vector<64x64xf32>
    %82 = arith.addf %79, %81 : vector<64x64xf32>
    %cst_124 = arith.constant 0.000000e+00 : f32
    %83 = vector.broadcast %cst_124 : f32 to vector<64x64xf32>
    %84 = arith.maximumf %82, %83 : vector<64x64xf32>
    %85 = vector.shape_cast %84 : vector<64x64xf32> to vector<1x8x8x64xf32>
    %c0_125 = arith.constant 0 : index
    %c0_126 = arith.constant 0 : index
    %c0_127 = arith.constant 0 : index
    %c0_128 = arith.constant 0 : index
    %86 = vector.load %arg10[%c0_125, %c0_126, %c0_127, %c0_128] : memref<1x8x8x64xf32, #tpu.memory_space<vmem>>, vector<1x8x8x64xf32>
    tpu.vector_store %arg10[%c0_125, %c0_126, %c0_127, %c0_128], %85 {strides = array<i32>} : memref<1x8x8x64xf32, #tpu.memory_space<vmem>>, vector<1x8x8x64xf32>,
    %c0_129 = arith.constant 0 : index
    %c0_130 = arith.constant 0 : index
    %c0_131 = arith.constant 0 : index
    %c0_132 = arith.constant 0 : index
    %87 = tpu.strided_load %arg10[%c0_129, %c0_130, %c0_131, %c0_132] {strides = array<i32: 1, 2, 2, 1>} : memref<1x8x8x64xf32, #tpu.memory_space<vmem>>, vector<1x4x4x64xf32>
    %c0_133 = arith.constant 0 : index
    %c0_134 = arith.constant 0 : index
    %c1_135 = arith.constant 1 : index
    %c0_136 = arith.constant 0 : index
    %88 = tpu.strided_load %arg10[%c0_133, %c0_134, %c1_135, %c0_136] {strides = array<i32: 1, 2, 2, 1>} : memref<1x8x8x64xf32, #tpu.memory_space<vmem>>, vector<1x4x4x64xf32>
    %c0_137 = arith.constant 0 : index
    %c1_138 = arith.constant 1 : index
    %c0_139 = arith.constant 0 : index
    %c0_140 = arith.constant 0 : index
    %89 = tpu.strided_load %arg10[%c0_137, %c1_138, %c0_139, %c0_140] {strides = array<i32: 1, 2, 2, 1>} : memref<1x8x8x64xf32, #tpu.memory_space<vmem>>, vector<1x4x4x64xf32>
    %c0_141 = arith.constant 0 : index
    %c1_142 = arith.constant 1 : index
    %c1_143 = arith.constant 1 : index
    %c0_144 = arith.constant 0 : index
    %90 = tpu.strided_load %arg10[%c0_141, %c1_142, %c1_143, %c0_144] {strides = array<i32: 1, 2, 2, 1>} : memref<1x8x8x64xf32, #tpu.memory_space<vmem>>, vector<1x4x4x64xf32>
    %91 = arith.maximumf %87, %88 : vector<1x4x4x64xf32>
    %92 = arith.maximumf %89, %90 : vector<1x4x4x64xf32>
    %93 = arith.maximumf %91, %92 : vector<1x4x4x64xf32>
    %c0_145 = arith.constant 0 : index
    %c1_146 = arith.constant 1 : index
    %c1_147 = arith.constant 1 : index
    %c0_148 = arith.constant 0 : index
    %94 = vector.load %arg11[%c0_145, %c1_146, %c1_147, %c0_148] : memref<1x6x6x64xf32, #tpu.memory_space<vmem>>, vector<1x4x4x64xf32>
    tpu.vector_store %arg11[%c0_145, %c1_146, %c1_147, %c0_148], %93 {strides = array<i32>} : memref<1x6x6x64xf32, #tpu.memory_space<vmem>>, vector<1x4x4x64xf32>,
    %cst_149 = arith.constant 0.000000e+00 : f32
    %95 = vector.broadcast %cst_149 : f32 to vector<16x128xf32>
    %c0_150 = arith.constant 0 : index
    %c0_151 = arith.constant 0 : index
    %c0_152 = arith.constant 0 : index
    %c0_153 = arith.constant 0 : index
    %96 = vector.load %arg11[%c0_150, %c0_151, %c0_152, %c0_153] : memref<1x6x6x64xf32, #tpu.memory_space<vmem>>, vector<1x4x4x64xf32>
    %97 = vector.shape_cast %96 : vector<1x4x4x64xf32> to vector<16x64xf32>
    %c0_154 = arith.constant 0 : index
    %c0_155 = arith.constant 0 : index
    %98 = vector.load %arg4[%c0_154, %c0_155] : memref<576x128xf32, #tpu.memory_space<vmem>>, vector<64x128xf32>
    %cst_156 = arith.constant dense<0.000000e+00> : vector<16x128xf32>
    %99 = tpu.matmul %97, %98, %cst_156 {dimension_numbers = #tpu.dot_dimension_numbers<[1], [0], [0], [1], [0, 0, 1, 1], [], []>} : vector<16x64xf32>, vector<64x128xf32>, vector<16x128xf32> -> vector<16x128xf32>
    %100 = arith.addf %95, %99 : vector<16x128xf32>
    %c0_157 = arith.constant 0 : index
    %c0_158 = arith.constant 0 : index
    %c1_159 = arith.constant 1 : index
    %c0_160 = arith.constant 0 : index
    %101 = vector.load %arg11[%c0_157, %c0_158, %c1_159, %c0_160] : memref<1x6x6x64xf32, #tpu.memory_space<vmem>>, vector<1x4x4x64xf32>
    %102 = vector.shape_cast %101 : vector<1x4x4x64xf32> to vector<16x64xf32>
    %c64_161 = arith.constant 64 : index
    %c0_162 = arith.constant 0 : index
    %103 = vector.load %arg4[%c64_161, %c0_162] : memref<576x128xf32, #tpu.memory_space<vmem>>, vector<64x128xf32>
    %cst_163 = arith.constant dense<0.000000e+00> : vector<16x128xf32>
    %104 = tpu.matmul %102, %103, %cst_163 {dimension_numbers = #tpu.dot_dimension_numbers<[1], [0], [0], [1], [0, 0, 1, 1], [], []>} : vector<16x64xf32>, vector<64x128xf32>, vector<16x128xf32> -> vector<16x128xf32>
    %105 = arith.addf %100, %104 : vector<16x128xf32>
    %c0_164 = arith.constant 0 : index
    %c0_165 = arith.constant 0 : index
    %c2_166 = arith.constant 2 : index
    %c0_167 = arith.constant 0 : index
    %106 = vector.load %arg11[%c0_164, %c0_165, %c2_166, %c0_167] : memref<1x6x6x64xf32, #tpu.memory_space<vmem>>, vector<1x4x4x64xf32>
    %107 = vector.shape_cast %106 : vector<1x4x4x64xf32> to vector<16x64xf32>
    %c128_168 = arith.constant 128 : index
    %c0_169 = arith.constant 0 : index
    %108 = vector.load %arg4[%c128_168, %c0_169] : memref<576x128xf32, #tpu.memory_space<vmem>>, vector<64x128xf32>
    %cst_170 = arith.constant dense<0.000000e+00> : vector<16x128xf32>
    %109 = tpu.matmul %107, %108, %cst_170 {dimension_numbers = #tpu.dot_dimension_numbers<[1], [0], [0], [1], [0, 0, 1, 1], [], []>} : vector<16x64xf32>, vector<64x128xf32>, vector<16x128xf32> -> vector<16x128xf32>
    %110 = arith.addf %105, %109 : vector<16x128xf32>
    %c0_171 = arith.constant 0 : index
    %c1_172 = arith.constant 1 : index
    %c0_173 = arith.constant 0 : index
    %c0_174 = arith.constant 0 : index
    %111 = vector.load %arg11[%c0_171, %c1_172, %c0_173, %c0_174] : memref<1x6x6x64xf32, #tpu.memory_space<vmem>>, vector<1x4x4x64xf32>
    %112 = vector.shape_cast %111 : vector<1x4x4x64xf32> to vector<16x64xf32>
    %c192_175 = arith.constant 192 : index
    %c0_176 = arith.constant 0 : index
    %113 = vector.load %arg4[%c192_175, %c0_176] : memref<576x128xf32, #tpu.memory_space<vmem>>, vector<64x128xf32>
    %cst_177 = arith.constant dense<0.000000e+00> : vector<16x128xf32>
    %114 = tpu.matmul %112, %113, %cst_177 {dimension_numbers = #tpu.dot_dimension_numbers<[1], [0], [0], [1], [0, 0, 1, 1], [], []>} : vector<16x64xf32>, vector<64x128xf32>, vector<16x128xf32> -> vector<16x128xf32>
    %115 = arith.addf %110, %114 : vector<16x128xf32>
    %c0_178 = arith.constant 0 : index
    %c1_179 = arith.constant 1 : index
    %c1_180 = arith.constant 1 : index
    %c0_181 = arith.constant 0 : index
    %116 = vector.load %arg11[%c0_178, %c1_179, %c1_180, %c0_181] : memref<1x6x6x64xf32, #tpu.memory_space<vmem>>, vector<1x4x4x64xf32>
    %117 = vector.shape_cast %116 : vector<1x4x4x64xf32> to vector<16x64xf32>
    %c256_182 = arith.constant 256 : index
    %c0_183 = arith.constant 0 : index
    %118 = vector.load %arg4[%c256_182, %c0_183] : memref<576x128xf32, #tpu.memory_space<vmem>>, vector<64x128xf32>
    %cst_184 = arith.constant dense<0.000000e+00> : vector<16x128xf32>
    %119 = tpu.matmul %117, %118, %cst_184 {dimension_numbers = #tpu.dot_dimension_numbers<[1], [0], [0], [1], [0, 0, 1, 1], [], []>} : vector<16x64xf32>, vector<64x128xf32>, vector<16x128xf32> -> vector<16x128xf32>
    %120 = arith.addf %115, %119 : vector<16x128xf32>
    %c0_185 = arith.constant 0 : index
    %c1_186 = arith.constant 1 : index
    %c2_187 = arith.constant 2 : index
    %c0_188 = arith.constant 0 : index
    %121 = vector.load %arg11[%c0_185, %c1_186, %c2_187, %c0_188] : memref<1x6x6x64xf32, #tpu.memory_space<vmem>>, vector<1x4x4x64xf32>
    %122 = vector.shape_cast %121 : vector<1x4x4x64xf32> to vector<16x64xf32>
    %c320 = arith.constant 320 : index
    %c0_189 = arith.constant 0 : index
    %123 = vector.load %arg4[%c320, %c0_189] : memref<576x128xf32, #tpu.memory_space<vmem>>, vector<64x128xf32>
    %cst_190 = arith.constant dense<0.000000e+00> : vector<16x128xf32>
    %124 = tpu.matmul %122, %123, %cst_190 {dimension_numbers = #tpu.dot_dimension_numbers<[1], [0], [0], [1], [0, 0, 1, 1], [], []>} : vector<16x64xf32>, vector<64x128xf32>, vector<16x128xf32> -> vector<16x128xf32>
    %125 = arith.addf %120, %124 : vector<16x128xf32>
    %c0_191 = arith.constant 0 : index
    %c2_192 = arith.constant 2 : index
    %c0_193 = arith.constant 0 : index
    %c0_194 = arith.constant 0 : index
    %126 = vector.load %arg11[%c0_191, %c2_192, %c0_193, %c0_194] : memref<1x6x6x64xf32, #tpu.memory_space<vmem>>, vector<1x4x4x64xf32>
    %127 = vector.shape_cast %126 : vector<1x4x4x64xf32> to vector<16x64xf32>
    %c384 = arith.constant 384 : index
    %c0_195 = arith.constant 0 : index
    %128 = vector.load %arg4[%c384, %c0_195] : memref<576x128xf32, #tpu.memory_space<vmem>>, vector<64x128xf32>
    %cst_196 = arith.constant dense<0.000000e+00> : vector<16x128xf32>
    %129 = tpu.matmul %127, %128, %cst_196 {dimension_numbers = #tpu.dot_dimension_numbers<[1], [0], [0], [1], [0, 0, 1, 1], [], []>} : vector<16x64xf32>, vector<64x128xf32>, vector<16x128xf32> -> vector<16x128xf32>
    %130 = arith.addf %125, %129 : vector<16x128xf32>
    %c0_197 = arith.constant 0 : index
    %c2_198 = arith.constant 2 : index
    %c1_199 = arith.constant 1 : index
    %c0_200 = arith.constant 0 : index
    %131 = vector.load %arg11[%c0_197, %c2_198, %c1_199, %c0_200] : memref<1x6x6x64xf32, #tpu.memory_space<vmem>>, vector<1x4x4x64xf32>
    %132 = vector.shape_cast %131 : vector<1x4x4x64xf32> to vector<16x64xf32>
    %c448 = arith.constant 448 : index
    %c0_201 = arith.constant 0 : index
    %133 = vector.load %arg4[%c448, %c0_201] : memref<576x128xf32, #tpu.memory_space<vmem>>, vector<64x128xf32>
    %cst_202 = arith.constant dense<0.000000e+00> : vector<16x128xf32>
    %134 = tpu.matmul %132, %133, %cst_202 {dimension_numbers = #tpu.dot_dimension_numbers<[1], [0], [0], [1], [0, 0, 1, 1], [], []>} : vector<16x64xf32>, vector<64x128xf32>, vector<16x128xf32> -> vector<16x128xf32>
    %135 = arith.addf %130, %134 : vector<16x128xf32>
    %c0_203 = arith.constant 0 : index
    %c2_204 = arith.constant 2 : index
    %c2_205 = arith.constant 2 : index
    %c0_206 = arith.constant 0 : index
    %136 = vector.load %arg11[%c0_203, %c2_204, %c2_205, %c0_206] : memref<1x6x6x64xf32, #tpu.memory_space<vmem>>, vector<1x4x4x64xf32>
    %137 = vector.shape_cast %136 : vector<1x4x4x64xf32> to vector<16x64xf32>
    %c512 = arith.constant 512 : index
    %c0_207 = arith.constant 0 : index
    %138 = vector.load %arg4[%c512, %c0_207] : memref<576x128xf32, #tpu.memory_space<vmem>>, vector<64x128xf32>
    %cst_208 = arith.constant dense<0.000000e+00> : vector<16x128xf32>
    %139 = tpu.matmul %137, %138, %cst_208 {dimension_numbers = #tpu.dot_dimension_numbers<[1], [0], [0], [1], [0, 0, 1, 1], [], []>} : vector<16x64xf32>, vector<64x128xf32>, vector<16x128xf32> -> vector<16x128xf32>
    %140 = arith.addf %135, %139 : vector<16x128xf32>
    %c2_209 = arith.constant 2 : index
    %c0_210 = arith.constant 0 : index
    %141 = vector.load %arg6[%c2_209, %c0_210] : memref<4x128xf32, #tpu.memory_space<vmem>>, vector<1x128xf32>
    %142 = vector.broadcast %141 : vector<1x128xf32> to vector<16x128xf32>
    %143 = arith.addf %140, %142 : vector<16x128xf32>
    %cst_211 = arith.constant 0.000000e+00 : f32
    %144 = vector.broadcast %cst_211 : f32 to vector<16x128xf32>
    %145 = arith.maximumf %143, %144 : vector<16x128xf32>
    %146 = vector.shape_cast %145 : vector<16x128xf32> to vector<1x4x4x128xf32>
    %c0_212 = arith.constant 0 : index
    %c0_213 = arith.constant 0 : index
    %c0_214 = arith.constant 0 : index
    %c0_215 = arith.constant 0 : index
    %147 = vector.load %arg12[%c0_212, %c0_213, %c0_214, %c0_215] : memref<1x4x4x128xf32, #tpu.memory_space<vmem>>, vector<1x4x4x128xf32>
    tpu.vector_store %arg12[%c0_212, %c0_213, %c0_214, %c0_215], %146 {strides = array<i32>} : memref<1x4x4x128xf32, #tpu.memory_space<vmem>>, vector<1x4x4x128xf32>,
    %c0_216 = arith.constant 0 : index
    %c0_217 = arith.constant 0 : index
    %c0_218 = arith.constant 0 : index
    %c0_219 = arith.constant 0 : index
    %148 = tpu.strided_load %arg12[%c0_216, %c0_217, %c0_218, %c0_219] {strides = array<i32: 1, 2, 2, 1>} : memref<1x4x4x128xf32, #tpu.memory_space<vmem>>, vector<1x2x2x128xf32>
    %c0_220 = arith.constant 0 : index
    %c0_221 = arith.constant 0 : index
    %c1_222 = arith.constant 1 : index
    %c0_223 = arith.constant 0 : index
    %149 = tpu.strided_load %arg12[%c0_220, %c0_221, %c1_222, %c0_223] {strides = array<i32: 1, 2, 2, 1>} : memref<1x4x4x128xf32, #tpu.memory_space<vmem>>, vector<1x2x2x128xf32>
    %c0_224 = arith.constant 0 : index
    %c1_225 = arith.constant 1 : index
    %c0_226 = arith.constant 0 : index
    %c0_227 = arith.constant 0 : index
    %150 = tpu.strided_load %arg12[%c0_224, %c1_225, %c0_226, %c0_227] {strides = array<i32: 1, 2, 2, 1>} : memref<1x4x4x128xf32, #tpu.memory_space<vmem>>, vector<1x2x2x128xf32>
    %c0_228 = arith.constant 0 : index
    %c1_229 = arith.constant 1 : index
    %c1_230 = arith.constant 1 : index
    %c0_231 = arith.constant 0 : index
    %151 = tpu.strided_load %arg12[%c0_228, %c1_229, %c1_230, %c0_231] {strides = array<i32: 1, 2, 2, 1>} : memref<1x4x4x128xf32, #tpu.memory_space<vmem>>, vector<1x2x2x128xf32>
    %152 = arith.maximumf %148, %149 : vector<1x2x2x128xf32>
    %153 = arith.maximumf %150, %151 : vector<1x2x2x128xf32>
    %154 = arith.maximumf %152, %153 : vector<1x2x2x128xf32>
    %155 = vector.extract_strided_slice %154 {offsets = [0, 0, 0, 0], sizes = [1, 1, 1, 128], strides = [1, 1, 1, 1]} : vector<1x2x2x128xf32> to vector<1x1x1x128xf32>
    %156 = vector.shape_cast %155 : vector<1x1x1x128xf32> to vector<1x128xf32>
    %157 = vector.extract_strided_slice %154 {offsets = [0, 0, 1, 0], sizes = [1, 1, 1, 128], strides = [1, 1, 1, 1]} : vector<1x2x2x128xf32> to vector<1x1x1x128xf32>
    %158 = vector.shape_cast %157 : vector<1x1x1x128xf32> to vector<1x128xf32>
    %159 = arith.addf %156, %158 : vector<1x128xf32>
    %160 = vector.extract_strided_slice %154 {offsets = [0, 1, 0, 0], sizes = [1, 1, 1, 128], strides = [1, 1, 1, 1]} : vector<1x2x2x128xf32> to vector<1x1x1x128xf32>
    %161 = vector.shape_cast %160 : vector<1x1x1x128xf32> to vector<1x128xf32>
    %162 = arith.addf %159, %161 : vector<1x128xf32>
    %163 = vector.extract_strided_slice %154 {offsets = [0, 1, 1, 0], sizes = [1, 1, 1, 128], strides = [1, 1, 1, 1]} : vector<1x2x2x128xf32> to vector<1x1x1x128xf32>
    %164 = vector.shape_cast %163 : vector<1x1x1x128xf32> to vector<1x128xf32>
    %165 = arith.addf %162, %164 : vector<1x128xf32>
    %cst_232 = arith.constant 2.500000e-01 : f32
    %166 = vector.broadcast %cst_232 : f32 to vector<1x128xf32>
    %167 = arith.mulf %165, %166 : vector<1x128xf32>
    %c0_233 = arith.constant 0 : index
    %c0_234 = arith.constant 0 : index
    %168 = vector.load %arg5[%c0_233, %c0_234] : memref<128x128xf32, #tpu.memory_space<vmem>>, vector<128x128xf32>
    %cst_235 = arith.constant dense<0.000000e+00> : vector<1x128xf32>
    %169 = tpu.matmul %167, %168, %cst_235 {dimension_numbers = #tpu.dot_dimension_numbers<[1], [0], [0], [1], [0, 0, 1, 1], [], []>} : vector<1x128xf32>, vector<128x128xf32>, vector<1x128xf32> -> vector<1x128xf32>
    %c3 = arith.constant 3 : index
    %c0_236 = arith.constant 0 : index
    %170 = vector.load %arg6[%c3, %c0_236] : memref<4x128xf32, #tpu.memory_space<vmem>>, vector<1x128xf32>
    %171 = arith.addf %169, %170 : vector<1x128xf32>
    %172 = vector.shape_cast %171 : vector<1x128xf32> to vector<1x1x128xf32>
    %c0_237 = arith.constant 0 : index
    %c0_238 = arith.constant 0 : index
    %c0_239 = arith.constant 0 : index
    %173 = vector.load %arg7[%c0_237, %c0_238, %c0_239] : memref<1x1x128xf32, #tpu.memory_space<vmem>>, vector<1x1x128xf32>
    tpu.vector_store %arg7[%c0_237, %c0_238, %c0_239], %172 {strides = array<i32>} : memref<1x1x128xf32, #tpu.memory_space<vmem>>, vector<1x1x128xf32>,
    return
  }
  func.func @transform_0(%arg0: i32) -> (i32, i32) {
    %c0_i32 = arith.constant 0 : i32
    %c0_i32_0 = arith.constant 0 : i32
    return %arg0, %c0_i32 : i32, i32
  }
  func.func @transform_1(%arg0: i32) -> (i32, i32) {
    %c0_i32 = arith.constant 0 : i32
    %c0_i32_0 = arith.constant 0 : i32
    %c0_i32_1 = arith.constant 0 : i32
    return %c0_i32, %c0_i32_0 : i32, i32
  }
  func.func @transform_2(%arg0: i32) -> (i32, i32) {
    %c0_i32 = arith.constant 0 : i32
    %c0_i32_0 = arith.constant 0 : i32
    %c0_i32_1 = arith.constant 0 : i32
    return %c0_i32, %c0_i32_0 : i32, i32
  }
  func.func @transform_3(%arg0: i32) -> (i32, i32) {
    %c0_i32 = arith.constant 0 : i32
    %c0_i32_0 = arith.constant 0 : i32
    %c0_i32_1 = arith.constant 0 : i32
    return %c0_i32, %c0_i32_0 : i32, i32
  }
  func.func @transform_4(%arg0: i32) -> (i32, i32) {
    %c0_i32 = arith.constant 0 : i32
    %c0_i32_0 = arith.constant 0 : i32
    %c0_i32_1 = arith.constant 0 : i32
    return %c0_i32, %c0_i32_0 : i32, i32
  }
  func.func @transform_5(%arg0: i32) -> (i32, i32) {
    %c0_i32 = arith.constant 0 : i32
    %c0_i32_0 = arith.constant 0 : i32
    %c0_i32_1 = arith.constant 0 : i32
    return %c0_i32, %c0_i32_0 : i32, i32
  }
  func.func @transform_6(%arg0: i32) -> (i32, i32, i32) {
    %c0_i32 = arith.constant 0 : i32
    %c0_i32_0 = arith.constant 0 : i32
    %c0_i32_1 = arith.constant 0 : i32
    return %arg0, %c0_i32, %c0_i32_0 : i32, i32, i32
  }
}

</mosaic_0001>

<bundles_post_ra>
// kernel: water_pollution_cnn.1
= control target key start
LH: loop header
LB: loop body
LE: loop exit
PB: predicated region body
PF: predicated region fallthrough
CT: control target
= control target key end

     0   :  { %11 = vsyncpa [#allocation8], 0  ;;  %s3499_s0 = inlined_call_operand.vmem [shape: f32[512,27], index: 0, kind: input, shape index: {}]   ;;  %s3500_s1 = inlined_call_operand.vmem [shape: f32[27,32], index: 1, kind: input, shape index: {}]   ;;  %s3501_s2 = inlined_call_operand.vmem [shape: f32[288,64], index: 2, kind: input, shape index: {}]   ;;  %s3502_s3 = inlined_call_operand.vmem [shape: f32[576,128], index: 3, kind: input, shape index: {}]   ;;  %s3503_s4 = inlined_call_operand.vmem [shape: f32[128,128], index: 4, kind: input, shape index: {}]   ;;  %s3504_s5 = inlined_call_operand.vmem [shape: f32[4,128], index: 5, kind: input, shape index: {}]   ;;  %s3505_s6 = inlined_call_operand.hbm [shape: f32[2,1,128], index: 6, kind: output, shape index: {}]  }
   0x1   :  { %13 = vsyncpa [#allocation8 + $0x1], 0  ;;  %s2477_s21 = smov 0   ;;  %s2479_s22 = smov 0  }
   0x2   :  { %s2481_s23 = smov 0   ;;  %s2483_s24 = smov 0  }
   0x3 LB: > { %s2498_s25 = sadd.s32 4294967295, %s2439_s24   ;;  %s2195_s26 = sadd.s32 4294967294, %s2439_s24   ;;  %s2439_s24 = sphi %s2483_s24, %s3511_s24   ;;  %s2435_s23 = sphi %s2481_s23, %s3510_s23   ;;  %s2431_s22 = sphi %s2479_s22, %s3509_s22   ;;  %s2427_s21 = sphi %s2477_s21, %s3508_s21  }
   0x4   : > { %s2502_s27 = sadd.s32 1, %s2439_s24   ;;  %s157_s28 = sadd.s32 1, %s2435_s23 }
   0x5   : > { %s154_s29 = ssub.s32 %s2439_s24, %s2502_s27  ;;  %p167_p0 = scmp.ne.s32.totalorder %s2435_s23, %s2431_s22 }
   0x6   : > { %p155_p1 = scmp.eq.s32.totalorder %s154_s29, 0  ;;  %p168_p2 = scmp.eq.s32.totalorder %s2498_s25, 1 }
   0x7   : > { %p173_p3 = scmp.ne.s32.totalorder %s2431_s22, %s2427_s21  ;;  %p174_p4 = scmp.eq.s32.totalorder %s2195_s26, 1 }
   0x8   : > { %s2513_s30 = scalar_select %p155_p1, %s2435_s23, %s157_s28  }
   0x9   : > { %p2515_p5 = por %p168_p2, %p167_p0  ;;  %p2519_p6 = por %p174_p4, %p173_p3 }
   0xa   : > { %p2198_p7 = scmp.ge.s32.totalorder %s2439_s24, 1  ;;  %p216_p8 = scmp.lt.s32.totalorder %s2439_s24, 3 }
   0xc   : > { %p217_p9 = pnand %p2198_p7, %p216_p8 }
   0xd   : > { %s2199_s13 = sshll.u32 (!%p217_p9), %s2498_s25, 5  ;;  %s243_s28 = sand.u32 (!%p217_p9), 1, %s2431_s22  }
   0xe   : > { %220 = sbr.rel (%p217_p9) target bundleno = 1036 (0x40c), region = 44  ;;  %p246_p10 = scmp.lt.s32.totalorder (!%p217_p9), %s2199_s13, 63 }
   0xf   : > { %s2111_s10 = scalar_lea.hbm (!%p217_p9), %s3505_s6, %s2498_s25  ;;  %s2103_s16 = scalar_lea.sflag (!%p217_p9), [#allocation8], %s243_s28 }
  0x10   : > { %s2115_s15 = sshll.u32 (!%p217_p9), %s2111_s10, 4  ;;  %s2397_s19 = scalar_lea.hbm (!%p217_p9), %s3505_s6, 2  ;;  %s2116_s15 = int_to_ptr.hbm [resolvable:$true] %s2115_s15 }
  0x11   : > { %s2391_s17 = sshra.s32 (!%p217_p9), %s2116_s15, 4  ;;  %s2392_s17 = int_to_ptr.hbm [resolvable:$true] %s2391_s17 }
  0x12   : > { %p2398_p0 = scmp.lt.s32.totalorder (!%p217_p9), %s2392_s17, %s3505_s6 }
  0x13   : > { %v331_v0 = vld [vmem:[%s3500_s1 + $0x18] sm:$0x7]  ;;  %vm431_vm0 = vcmask 1042432   ;;  %v330_v1 = vld [vmem:[%s3500_s1 + $0x10] sm:$0xff]  ;;  %v329_v2 = vld [vmem:[%s3500_s1 + $0x8] sm:$0xff]  ;;  %s3513_s13 = smov (!%p246_p10, %s2199_s13), 63 }
  0x14   : > { %2201 = vmatpush.msk.msra.mxu0 %vm431_vm0, %v331_v0  ;;  %2326 = vmatpush.msk.msra.mxu1 %vm431_vm0, %v331_v0  ;;  %v328_v3 = vld [vmem:[%s3500_s1] sm:$0xff]  ;;  %s2200_s18 = sshll.u32 %s3513_s13, 3  ;;  %vm334_vm1 = vcmask 220160   ;;  %vm251_vm2 = vcmask 261120   ;;  %vm253_vm3 = vcmask 254976   ;;  %v2441_v25 = vmov 0.0  }
  0x15   : > { %2327 = vmatpush.msk.msra.mxu2 %vm431_vm0, %v331_v0  ;;  %s2541_s26 = scalar_lea.vmem %s3499_s0, %s2200_s18  ;;  %v2578_v20 = vld [vmem:[%s3504_s5] ss:$0 sm:$0xff]  ;;  %252 = vst.msk [vmem:[#allocation3] sm:$0xff] %vm251_vm2, %v2441_v25  ;;  %v731_v27 = vld [vmem:[%s3501_s2 + $0x38] sm:$0xff]  ;;  %vm258_vm4 = vcmask 253952   ;;  %v730_v31 = vld [vmem:[%s3501_s2 + $0x30] sm:$0xff] }
  0x16   : > { %448 = vmatpush.msra.mxu0 %v330_v1  ;;  %2328 = vmatpush.msra.mxu1 %v330_v1  ;;  %v296_v4 = vld [vmem:[%s2541_s26] sm:$0xff]  ;;  %v297_v5 = vld [vmem:[%s2541_s26 + $0x8] sm:$0xff]  ;;  %v298_v6 = vld [vmem:[%s2541_s26 + $0x10] sm:$0xff]  ;;  %254 = vst.msk [vmem:[#allocation3 + $0x8] sm:$0x3] %vm253_vm3, %v2441_v25  ;;  %vm283_vm5 = vcmask 516096  }
  0x17   : > { %2329 = vmatpush.msra.mxu2 %v330_v1  ;;  %v299_v7 = vld [vmem:[%s2541_s26 + $0x18] sm:$0xff]  ;;  %v300_v8 = vld [vmem:[%s2541_s26 + $0x20] sm:$0xff]  ;;  %v301_v9 = vld [vmem:[%s2541_s26 + $0x28] sm:$0xff]  ;;  %256 = vst.msk [vmem:[#allocation3 + $0x90] sm:$0xff] %vm251_vm2, %v2441_v25  ;;  %vm279_vm6 = vcmask 521216   ;;  %vm1476_vm7 = vcmask 523264  }
  0x18   : > { %449 = vmatpush.msra.mxu0 %v329_v2  ;;  %2330 = vmatpush.msra.mxu1 %v329_v2  ;;  %v302_v10 = vld [vmem:[%s2541_s26 + $0x30] sm:$0xff]  ;;  %v303_v11 = vld [vmem:[%s2541_s26 + $0x38] sm:$0xff]  ;;  %v304_v12 = vld [vmem:[%s2541_s26 + $0x40] sm:$0xff]  ;;  %257 = vst.msk [vmem:[#allocation3 + $0x98] sm:$0x3] %vm253_vm3, %v2441_v25  ;;  %vm1529_vm8 = vcmask 519168  }
  0x19   : > { %2331 = vmatpush.msra.mxu2 %v329_v2  ;;  %v305_v13 = vld [vmem:[%s2541_s26 + $0x48] sm:$0xff]  ;;  %v306_v14 = vld [vmem:[%s2541_s26 + $0x50] sm:$0xff]  ;;  %v307_v15 = vld [vmem:[%s2541_s26 + $0x58] sm:$0xff]  ;;  %259 = vst.msk [vmem:[#allocation3] sm:$0x1] %vm258_vm4, %v2441_v25  ;;  %s244_s13 = scalar_lea.vmem [#allocation7], %s243_s28 }
  0x1a   : > { %450 = vmatpush.msra.mxu0 %v328_v3  ;;  %2332 = vmatpush.msra.mxu1 %v328_v3  ;;  %v308_v16 = vld [vmem:[%s2541_s26 + $0x60] sm:$0xff]  ;;  %v309_v17 = vld [vmem:[%s2541_s26 + $0x68] sm:$0xff]  ;;  %v310_v18 = vld [vmem:[%s2541_s26 + $0x70] sm:$0xff]  ;;  %260 = vst.msk [vmem:[#allocation3 + $0x10] sm:$0x1] %vm258_vm4, %v2441_v25  ;;  %s2113_s14 = sshll.u32 %s244_s13, 4  ;;  %s2114_s14 = int_to_ptr.vmem [resolvable:$true] %s2113_s14 }
  0x1b   : > { %2202 = vmatmul.msk.f32.vlgmr.msra.gmra.mxu0 %vm334_vm1, %v296_v4  ;;  %2333 = vmatpush.msra.mxu2 %v328_v3  ;;  %v311_v19 = vld [vmem:[%s2541_s26 + $0x78] sm:$0xff]  ;;  %v312_v22 = vld [vmem:[%s2541_s26 + $0x80] sm:$0xff]  ;;  %v326_v23 = vld [vmem:[%s2541_s26 + $0xf0] sm:$0xff]  ;;  %261 = vst.msk [vmem:[#allocation3 + $0x20] sm:$0x1] %vm258_vm4, %v2441_v25  ;;  %s2393_s18 = scalar_lea.hbm %s2392_s17, 1 }
  0x1c   : > { %v327_v24 = vld [vmem:[%s2541_s26 + $0xf8] sm:$0xff]  ;;  %2232 = vmatmul.msk.f32.vlgmr.msra.gmra.mxu1 %vm334_vm1, %v326_v23  ;;  %v718_v32 = vld [vmem:[%s3501_s2 + $0x10] sm:$0xff]  ;;  %v729_v34 = vld [vmem:[%s3501_s2 + $0x28] sm:$0xff]  ;;  %262 = vst.msk [vmem:[#allocation3 + $0x30] sm:$0x1] %vm258_vm4, %v2441_v25  ;;  %p2394_p11 = scmp.ne.s32.totalorder %s2392_s17, %s2393_s18  ;;  %p2399_p1 = scmp.lt.s32.totalorder %s2397_s19, %s2393_s18 }
  0x1d   : > { %2233 = vmatmul.msk.f32.vlgmr.msra.gmra.mxu2 %vm334_vm1, %v327_v24  ;;  %v719_v28 = vld [vmem:[%s3501_s2 + $0x18] sm:$0xff]  ;;  %768 = vmatpush.msrb.mxu1 %v731_v27  ;;  %v872_v33 = vld [vmem:[%s3501_s2 + $0x50] sm:$0xff]  ;;  %v717_v35 = vld [vmem:[%s3501_s2 + $0x8] sm:$0xff]  ;;  %263 = vst.msk [vmem:[#allocation3 + $0x40] sm:$0x1] %vm258_vm4, %v2441_v25 }
  0x1e   : > { %v873_v29 = vld [vmem:[%s3501_s2 + $0x58] sm:$0xff]  ;;  %833 = vmatpush.msrb.mxu2 %v719_v28  ;;  %v871_v36 = vld [vmem:[%s3501_s2 + $0x48] sm:$0xff]  ;;  %v728_v37 = vld [vmem:[%s3501_s2 + $0x20] sm:$0xff]  ;;  %264 = vst.msk [vmem:[#allocation3 + $0x50] sm:$0x1] %vm258_vm4, %v2441_v25  ;;  %p2395_p12 = pnand %p2394_p11, %p2515_p5  ;;  %p2400_p2 = por %p2399_p1, %p2398_p0 }
  0x1f   : > { %910 = vmatpush.msra.mxu3 %v873_v29  ;;  %769 = vmatpush.msrb.mxu1 %v730_v31  ;;  %v716_v38 = vld [vmem:[%s3501_s2] sm:$0xff]  ;;  %v313_v41 = vld [vmem:[%s2541_s26 + $0x88] sm:$0xff]  ;;  %265 = vst.msk [vmem:[#allocation3 + $0x60] sm:$0x1] %vm258_vm4, %v2441_v25  ;;  %v314_v47 = vld [vmem:[%s2541_s26 + $0x90] sm:$0xff] }
  0x20   : > { %834 = vmatpush.msrb.mxu2 %v718_v32  ;;  %v870_v39 = vld [vmem:[%s3501_s2 + $0x40] sm:$0xff]  ;;  %v720_v42 = vld [vmem:[#allocation3 + $0x1] sm:$0xff]  ;;  %266 = vst.msk [vmem:[#allocation3 + $0x70] sm:$0x1] %vm258_vm4, %v2441_v25  ;;  %v315_v52 = vld [vmem:[%s2541_s26 + $0x98] sm:$0xff]  ;;  %p2396_p13 = pneg %p2395_p12 }
  0x21   : > { %911 = vmatpush.msra.mxu3 %v872_v33  ;;  %770 = vmatpush.msrb.mxu1 %v729_v34  ;;  %v708_v45 = vld [vmem:[#allocation3] sm:$0xff]  ;;  %267 = vst.msk [vmem:[#allocation3 + $0x80] sm:$0x1] %vm258_vm4, %v2441_v25  ;;  %v316_v56 = vld [vmem:[%s2541_s26 + $0xa0] sm:$0xff]  ;;  %v322_v34 = vld [vmem:[%s2541_s26 + $0xd0] sm:$0xff] }
  0x22   : > { %835 = vmatpush.msrb.mxu2 %v717_v35  ;;  %268 = vst.msk [vmem:[#allocation3 + $0x90] sm:$0x1] %vm258_vm4, %v2441_v25  ;;  %v317_v3 = vld [vmem:[%s2541_s26 + $0xa8] sm:$0xff]  ;;  %p2401_p3 = pnand %p2400_p2, %p2396_p13 }
  0x23   : > { %2203 = vmatmul.msk.f32.gmra.mxu0 %vm334_vm1, %v297_v5  ;;  %912 = vmatpush.msra.mxu3 %v871_v36  ;;  %269 = vst.msk [vmem:[#allocation3 + $0x9] sm:$0x1] %vm258_vm4, %v2441_v25  ;;  %v321_v31 = vld [vmem:[%s2541_s26 + $0xc8] sm:$0xff] }
  0x24   : > { %771 = vmatpush.msrb.mxu1 %v728_v37  ;;  %836 = vmatpush.msrb.mxu2 %v716_v38  ;;  %270 = vst.msk [vmem:[#allocation3 + $0x19] sm:$0x1] %vm258_vm4, %v2441_v25 }
  0x25   : > { %913 = vmatpush.msra.mxu3 %v870_v39  ;;  %2234 = vmatmul.msk.f32.vlgmr.msrb.gmra.mxu1 %vm251_vm2, %v720_v42  ;;  %271 = vst.msk [vmem:[#allocation3 + $0x29] sm:$0x1] %vm258_vm4, %v2441_v25  ;;  %v323_v42 = vld [vmem:[%s2541_s26 + $0xd8] sm:$0xff] }
  0x26   : > { %2242 = vmatmul.msk.f32.vlgmr.msrb.gmra.mxu2 %vm251_vm2, %v708_v45  ;;  %272 = vst.msk [vmem:[#allocation3 + $0x39] sm:$0x1] %vm258_vm4, %v2441_v25 }
  0x27   : > { %273 = vst.msk [vmem:[#allocation3 + $0x49] sm:$0x1] %vm258_vm4, %v2441_v25 }
  0x28   : > { %274 = vst.msk [vmem:[#allocation3 + $0x59] sm:$0x1] %vm258_vm4, %v2441_v25 }
  0x29   : > { %275 = vst.msk [vmem:[#allocation3 + $0x69] sm:$0x1] %vm258_vm4, %v2441_v25 }
  0x2a   : > { %v862_v50 = vld [vmem:[#allocation3 + $0x2] sm:$0xff]  ;;  %276 = vst.msk [vmem:[#allocation3 + $0x79] sm:$0x1] %vm258_vm4, %v2441_v25 }
  0x2b   : > { %2204 = vmatmul.msk.f32.gmra.mxu0 %vm334_vm1, %v298_v6  ;;  %2250 = vmatmul.msk.f32.vlgmr.msra.gmra.mxu3 %vm251_vm2, %v862_v50  ;;  %277 = vst.msk [vmem:[#allocation3 + $0x89] sm:$0x1] %vm258_vm4, %v2441_v25  ;;  %v318_v6 = vld [vmem:[%s2541_s26 + $0xb0] sm:$0xff] }
  0x2c   : > { %278 = vst.msk [vmem:[#allocation3 + $0x99] sm:$0x1] %vm258_vm4, %v2441_v25 }
  0x2d   : > { %285 = vst.msk [vmem:[#allocation5 + $0x8] sm:$0x1] %vm283_vm5, %v2441_v25 }
  0x2e   : > { %291 = vst.msk [vmem:[#allocation5 + $0xd] sm:$0x1] %vm283_vm5, %v2441_v25 }
  0x2f   : > { %286 = vst.msk [vmem:[#allocation5 + $0x10] sm:$0x1] %vm283_vm5, %v2441_v25 }
  0x30   : > { %287 = vst.msk [vmem:[#allocation5 + $0x18] sm:$0x1] %vm283_vm5, %v2441_v25 }
  0x31   : > { %288 = vst.msk [vmem:[#allocation5 + $0x20] sm:$0x1] %vm283_vm5, %v2441_v25 }
  0x32   : > { %292 = vst.msk [vmem:[#allocation5 + $0x15] sm:$0x1] %vm283_vm5, %v2441_v25 }
  0x33   : > { %2205 = vmatmul.msk.f32.gmra.mxu0 %vm334_vm1, %v299_v7  ;;  %293 = vst.msk [vmem:[#allocation5 + $0x1d] sm:$0x1] %vm283_vm5, %v2441_v25 }
  0x34   : > { %294 = vst.msk [vmem:[#allocation5 + $0x25] sm:$0x1] %vm283_vm5, %v2441_v25 }
  0x35   : > { %280 = vst.msk [vmem:[#allocation5] sm:$0x3f] %vm279_vm6, %v2441_v25 }
  0x36   : > { %282 = vst.msk [vmem:[#allocation5 + $0x28] sm:$0x3f] %vm279_vm6, %v2441_v25 }
  0x37   : > { %284 = vst.msk [vmem:[#allocation5] sm:$0x1] %vm283_vm5, %v2441_v25 }
  0x38   : > { %290 = vst.msk [vmem:[#allocation5 + $0x5] sm:$0x1] %vm283_vm5, %v2441_v25 }
  0x39   : > { %289 = vst.msk [vmem:[#allocation5 + $0x28] sm:$0x1] %vm283_vm5, %v2441_v25 }
  0x3a   : > { %295 = vst.msk [vmem:[#allocation5 + $0x2d] sm:$0x1] %vm283_vm5, %v2441_v25  ;;  %v1553_v25 = vld [vmem:[%s3502_s3 + $0x58] sm:$0xff] }
  0x3b   : > { %2206 = vmatmul.msk.f32.gmra.mxu0 %vm334_vm1, %v300_v8 }
  0x43   : > { %2207 = vmatmul.msk.f32.gmra.mxu0 %vm334_vm1, %v301_v9 }
  0x4b   : > { %2208 = vmatmul.msk.f32.gmra.mxu0 %vm334_vm1, %v302_v10 }
  0x53   : > { %2209 = vmatmul.msk.f32.gmra.mxu0 %vm334_vm1, %v303_v11 }
  0x5b   : > { %2210 = vmatmul.msk.f32.gmra.mxu0 %vm334_vm1, %v304_v12 }
  0x63   : > { %2211 = vmatmul.msk.f32.gmra.mxu0 %vm334_vm1, %v305_v13 }
  0x6b   : > { %2212 = vmatmul.msk.f32.gmra.mxu0 %vm334_vm1, %v306_v14  ;;  %v319_v14 = vld [vmem:[%s2541_s26 + $0xb8] sm:$0xff] }
  0x73   : > { %2213 = vmatmul.msk.f32.gmra.mxu0 %vm334_vm1, %v307_v15 }
  0x7b   : > { %2214 = vmatmul.msk.f32.gmra.mxu0 %vm334_vm1, %v308_v16 }
  0x83   : > { %2215 = vmatmul.msk.f32.gmra.mxu0 %vm334_vm1, %v309_v17 }
  0x8b   : > { %2216 = vmatmul.msk.f32.gmra.mxu0 %vm334_vm1, %v310_v18  ;;  %v320_v18 = vld [vmem:[%s2541_s26 + $0xc0] sm:$0xff] }
  0x93   : > { %2217 = vmatmul.msk.f32.gmra.mxu0 %vm334_vm1, %v311_v19 }
  0x98   : > { %v452_v21 = vpop.f32.mrf.mxu0 }
  0x99   : > { %v453_v26 = vadd.f32 %v2578_v20, %v452_v21 }
  0x9b   : > { %v548_v30 = vmax.f32 %v453_v26, 0.0  ;;  %2218 = vmatmul.msk.f32.gmra.mxu0 %vm334_vm1, %v312_v22 }
  0x9d   : > { %580 = vst.msk [vmem:[#allocation2] sm:$0xff] %vm251_vm2, %v548_v30 }
  0xa0   : > { %v455_v40 = vpop.f32.mrf.mxu0 }
  0xa1   : > { %v456_v43 = vadd.f32 %v2578_v20, %v455_v40 }
  0xa3   : > { %v549_v44 = vmax.f32 %v456_v43, 0.0  ;;  %2219 = vmatmul.msk.f32.gmra.mxu0 %vm334_vm1, %v313_v41 }
  0xa5   : > { %581 = vst.msk [vmem:[#allocation2 + $0x8] sm:$0xff] %vm251_vm2, %v549_v44 }
  0xa8   : > { %v458_v46 = vpop.f32.mrf.mxu0 }
  0xa9   : > { %v459_v48 = vadd.f32 %v2578_v20, %v458_v46 }
  0xab   : > { %v550_v49 = vmax.f32 %v459_v48, 0.0  ;;  %2220 = vmatmul.msk.f32.gmra.mxu0 %vm334_vm1, %v314_v47 }
  0xac   : > { %v612_v58 = vld [vmem:[#allocation2] ss:$2 sm:$0xff]  ;;  %v628_v59 = vld [vmem:[#allocation2 + $0x1] ss:$2 sm:$0xff] }
  0xad   : > { %582 = vst.msk [vmem:[#allocation2 + $0x10] sm:$0xff] %vm251_vm2, %v550_v49  ;;  %v675_v63 = vmax.f32 %v612_v58, %v628_v59  ;;  %v324_v58 = vld [vmem:[%s2541_s26 + $0xe0] sm:$0xff] }
  0xb0   : > { %v461_v51 = vpop.f32.mrf.mxu0 }
  0xb1   : > { %v462_v53 = vadd.f32 %v2578_v20, %v461_v51 }
  0xb3   : > { %v551_v54 = vmax.f32 %v462_v53, 0.0  ;;  %2221 = vmatmul.msk.f32.gmra.mxu0 %vm334_vm1, %v315_v52 }
  0xb5   : > { %583 = vst.msk [vmem:[#allocation2 + $0x18] sm:$0xff] %vm251_vm2, %v551_v54 }
  0xb8   : > { %v464_v55 = vpop.f32.mrf.mxu0 }
  0xb9   : > { %v465_v57 = vadd.f32 %v2578_v20, %v464_v55 }
  0xbb   : > { %v552_v60 = vmax.f32 %v465_v57, 0.0  ;;  %2222 = vmatmul.msk.f32.gmra.mxu0 %vm334_vm1, %v316_v56 }
  0xbc   : > { %v644_v61 = vld [vmem:[#allocation2 + $0x10] ss:$2 sm:$0xff]  ;;  %v660_v62 = vld [vmem:[#allocation2 + $0x11] ss:$2 sm:$0xff] }
  0xbd   : > { %v683_v0 = vmax.f32 %v644_v61, %v660_v62  ;;  %584 = vst.msk [vmem:[#allocation2 + $0x20] sm:$0xff] %vm251_vm2, %v552_v60 }
  0xbf   : > { %v691_v1 = vmax.f32 %v675_v63, %v683_v0 }
  0xc0   : > { %v467_v2 = vpop.f32.mrf.mxu0 }
  0xc1   : > { %v468_v4 = vadd.f32 %v2578_v20, %v467_v2  ;;  %700 = vst.msk [vmem:[#allocation3 + $0x11] sm:$0xff] %vm251_vm2, %v691_v1  ;;  %v325_v1 = vld [vmem:[%s2541_s26 + $0xe8] sm:$0xff] }
  0xc3   : > { %v553_v5 = vmax.f32 %v468_v4, 0.0  ;;  %2223 = vmatmul.msk.f32.gmra.mxu0 %vm334_vm1, %v317_v3 }
  0xc5   : > { %585 = vst.msk [vmem:[#allocation2 + $0x28] sm:$0xff] %vm251_vm2, %v553_v5 }
  0xc8   : > { %v470_v7 = vpop.f32.mrf.mxu0  ;;  %v2697_v8 = vld [vmem:[#allocation3 + $0x11] sm:$0xff] }
  0xc9   : > { %v2699_v9 = vld [vmem:[#allocation3 + $0x10] sm:$0xff]  ;;  %v471_v11 = vadd.f32 %v2578_v20, %v470_v7  ;;  %2235 = vmatmul.msk.f32.gmra.mxu1 %vm251_vm2, %v2697_v8 }
  0xca   : > { %v2701_v10 = vld [vmem:[#allocation3 + $0x12] sm:$0xff]  ;;  %2243 = vmatmul.msk.f32.gmra.mxu2 %vm251_vm2, %v2699_v9 }
  0xcb   : > { %2251 = vmatmul.msk.f32.gmra.mxu3 %vm251_vm2, %v2701_v10  ;;  %v554_v12 = vmax.f32 %v471_v11, 0.0  ;;  %2224 = vmatmul.msk.f32.gmra.mxu0 %vm334_vm1, %v318_v6 }
  0xcc   : > { %v614_v21 = vld [vmem:[#allocation2 + $0x20] ss:$2 sm:$0xff]  ;;  %v630_v22 = vld [vmem:[#allocation2 + $0x21] ss:$2 sm:$0xff] }
  0xcd   : > { %586 = vst.msk [vmem:[#allocation2 + $0x30] sm:$0xff] %vm251_vm2, %v554_v12  ;;  %v676_v27 = vmax.f32 %v614_v21, %v630_v22 }
  0xd0   : > { %v473_v13 = vpop.f32.mrf.mxu0 }
  0xd1   : > { %v474_v15 = vadd.f32 %v2578_v20, %v473_v13 }
  0xd3   : > { %v555_v16 = vmax.f32 %v474_v15, 0.0  ;;  %2225 = vmatmul.msk.f32.gmra.mxu0 %vm334_vm1, %v319_v14  ;;  %v542_v15 = vpop.f32.mrf.mxu1 }
  0xd5   : > { %587 = vst.msk [vmem:[#allocation2 + $0x38] sm:$0xff] %vm251_vm2, %v555_v16 }
  0xd8   : > { %v476_v17 = vpop.f32.mrf.mxu0 }
  0xd9   : > { %v477_v19 = vadd.f32 %v2578_v20, %v476_v17 }
  0xdb   : > { %v556_v23 = vmax.f32 %v477_v19, 0.0  ;;  %2226 = vmatmul.msk.f32.gmra.mxu0 %vm334_vm1, %v320_v18  ;;  %v543_v18 = vadd.f32 %v2578_v20, %v542_v15  ;;  %v545_v19 = vpop.f32.mrf.mxu2 }
  0xdc   : > { %v646_v24 = vld [vmem:[#allocation2 + $0x30] ss:$2 sm:$0xff]  ;;  %v662_v26 = vld [vmem:[#allocation2 + $0x31] ss:$2 sm:$0xff]  ;;  %v546_v21 = vadd.f32 %v2578_v20, %v545_v19 }
  0xdd   : > { %v684_v28 = vmax.f32 %v646_v24, %v662_v26  ;;  %588 = vst.msk [vmem:[#allocation2 + $0x40] sm:$0xff] %vm251_vm2, %v556_v23  ;;  %v578_v23 = vmax.f32 %v543_v18, 0.0 }
  0xde   : > { %v579_v26 = vmax.f32 %v546_v21, 0.0  ;;  %v1041_v21 = vld [vmem:[%s3501_s2 + $0x88] sm:$0xff] }
  0xdf   : > { %v692_v29 = vmax.f32 %v676_v27, %v684_v28  ;;  %610 = vst.msk [vmem:[#allocation2 + $0xf0] sm:$0xff] %vm251_vm2, %v578_v23  ;;  %v956_v23 = vld [vmem:[%s3501_s2 + $0x68] sm:$0xff] }
  0xe0   : > { %v479_v30 = vpop.f32.mrf.mxu0  ;;  %611 = vst.msk [vmem:[#allocation2 + $0xf8] sm:$0xff] %vm251_vm2, %v579_v26  ;;  %v1125_v26 = vld [vmem:[%s3501_s2 + $0xa0] sm:$0xff] }
  0xe1   : > { %v480_v32 = vadd.f32 %v2578_v20, %v479_v30  ;;  %701 = vst.msk [vmem:[#allocation3 + $0x21] sm:$0xff] %vm251_vm2, %v692_v29 }
  0xe3   : > { %v557_v33 = vmax.f32 %v480_v32, 0.0  ;;  %2227 = vmatmul.msk.f32.gmra.mxu0 %vm334_vm1, %v321_v31 }
  0xe5   : > { %589 = vst.msk [vmem:[#allocation2 + $0x48] sm:$0xff] %vm251_vm2, %v557_v33 }
  0xe8   : > { %v482_v35 = vpop.f32.mrf.mxu0  ;;  %v2726_v36 = vld [vmem:[#allocation3 + $0x21] sm:$0xff] }
  0xe9   : > { %v2728_v37 = vld [vmem:[#allocation3 + $0x20] sm:$0xff]  ;;  %v483_v39 = vadd.f32 %v2578_v20, %v482_v35  ;;  %2236 = vmatmul.msk.f32.gmra.mxu1 %vm251_vm2, %v2726_v36 }
  0xea   : > { %v2730_v38 = vld [vmem:[#allocation3 + $0x22] sm:$0xff]  ;;  %2244 = vmatmul.msk.f32.gmra.mxu2 %vm251_vm2, %v2728_v37 }
  0xeb   : > { %2252 = vmatmul.msk.f32.gmra.mxu3 %vm251_vm2, %v2730_v38  ;;  %v558_v40 = vmax.f32 %v483_v39, 0.0  ;;  %2228 = vmatmul.msk.f32.gmra.mxu0 %vm334_vm1, %v322_v34 }
  0xec   : > { %v616_v47 = vld [vmem:[#allocation2 + $0x40] ss:$2 sm:$0xff]  ;;  %v632_v48 = vld [vmem:[#allocation2 + $0x41] ss:$2 sm:$0xff] }
  0xed   : > { %590 = vst.msk [vmem:[#allocation2 + $0x50] sm:$0xff] %vm251_vm2, %v558_v40  ;;  %v677_v52 = vmax.f32 %v616_v47, %v632_v48 }
  0xf0   : > { %v485_v41 = vpop.f32.mrf.mxu0 }
  0xf1   : > { %v486_v43 = vadd.f32 %v2578_v20, %v485_v41 }
  0xf3   : > { %v559_v44 = vmax.f32 %v486_v43, 0.0  ;;  %2229 = vmatmul.msk.f32.gmra.mxu0 %vm334_vm1, %v323_v42 }
  0xf5   : > { %591 = vst.msk [vmem:[#allocation2 + $0x58] sm:$0xff] %vm251_vm2, %v559_v44 }
  0xf8   : > { %v488_v45 = vpop.f32.mrf.mxu0 }
  0xf9   : > { %v489_v46 = vadd.f32 %v2578_v20, %v488_v45 }
  0xfb   : > { %v560_v49 = vmax.f32 %v489_v46, 0.0  ;;  %2230 = vmatmul.msk.f32.gmra.mxu0 %vm334_vm1, %v324_v58 }
  0xfc   : > { %v648_v50 = vld [vmem:[#allocation2 + $0x50] ss:$2 sm:$0xff]  ;;  %v664_v51 = vld [vmem:[#allocation2 + $0x51] ss:$2 sm:$0xff] }
  0xfd   : > { %v685_v53 = vmax.f32 %v648_v50, %v664_v51  ;;  %592 = vst.msk [vmem:[#allocation2 + $0x60] sm:$0xff] %vm251_vm2, %v560_v49  ;;  %v1043_v50 = vld [vmem:[%s3501_s2 + $0x98] sm:$0xff] }
  0xfe   : > { %v1128_v51 = vld [vmem:[%s3501_s2 + $0xb8] sm:$0xff]  ;;  %1080 = vmatpush.msra.mxu2 %v1043_v50 }
  0xff   : > { %v693_v54 = vmax.f32 %v677_v52, %v685_v53  ;;  %v958_v52 = vld [vmem:[%s3501_s2 + $0x78] sm:$0xff]  ;;  %1165 = vmatpush.msrb.mxu3 %v1128_v51 }
 0x100   : > { %v491_v55 = vpop.f32.mrf.mxu0  ;;  %995 = vmatpush.msra.mxu1 %v958_v52 }
 0x101   : > { %v492_v56 = vadd.f32 %v2578_v20, %v491_v55  ;;  %702 = vst.msk [vmem:[#allocation3 + $0x31] sm:$0xff] %vm251_vm2, %v693_v54 }
 0x103   : > { %v561_v57 = vmax.f32 %v492_v56, 0.0  ;;  %2231 = vmatmul.msk.f32.gmra.mxu0 %vm334_vm1, %v325_v1 }
 0x105   : > { %593 = vst.msk [vmem:[#allocation2 + $0x68] sm:$0xff] %vm251_vm2, %v561_v57 }
 0x108   : > { %v494_v59 = vpop.f32.mrf.mxu0  ;;  %v2752_v60 = vld [vmem:[#allocation3 + $0x31] sm:$0xff] }
 0x109   : > { %v2754_v61 = vld [vmem:[#allocation3 + $0x30] sm:$0xff]  ;;  %v495_v63 = vadd.f32 %v2578_v20, %v494_v59  ;;  %2237 = vmatmul.msk.f32.gmra.mxu1 %vm251_vm2, %v2752_v60 }
 0x10a   : > { %v2756_v62 = vld [vmem:[#allocation3 + $0x32] sm:$0xff]  ;;  %2245 = vmatmul.msk.f32.gmra.mxu2 %vm251_vm2, %v2754_v61 }
 0x10b   : > { %2253 = vmatmul.msk.f32.gmra.mxu3 %vm251_vm2, %v2756_v62  ;;  %v562_v0 = vmax.f32 %v495_v63, 0.0 }
 0x10c   : > { %v618_v7 = vld [vmem:[#allocation2 + $0x60] ss:$2 sm:$0xff]  ;;  %v634_v11 = vld [vmem:[#allocation2 + $0x61] ss:$2 sm:$0xff] }
 0x10d   : > { %594 = vst.msk [vmem:[#allocation2 + $0x70] sm:$0xff] %vm251_vm2, %v562_v0  ;;  %v678_v16 = vmax.f32 %v618_v7, %v634_v11 }
 0x110   : > { %v497_v2 = vpop.f32.mrf.mxu0 }
 0x111   : > { %v498_v3 = vadd.f32 %v2578_v20, %v497_v2  ;;  %v1042_v2 = vld [vmem:[%s3501_s2 + $0x90] sm:$0xff] }
 0x112   : > { %1081 = vmatpush.msra.mxu2 %v1042_v2  ;;  %v1383_v2 = vld [vmem:[%s3501_s2 + $0x110] sm:$0xff] }
 0x113   : > { %v563_v4 = vmax.f32 %v498_v3, 0.0  ;;  %v1127_v3 = vld [vmem:[%s3501_s2 + $0xb0] sm:$0xff] }
 0x114   : > { %1166 = vmatpush.msrb.mxu3 %v1127_v3  ;;  %1082 = vmatpush.msra.mxu2 %v1041_v21  ;;  %v1213_v3 = vld [vmem:[%s3501_s2 + $0xd0] sm:$0xff]  ;;  %v1296_v21 = vld [vmem:[%s3501_s2 + $0xe0] sm:$0xff] }
 0x115   : > { %595 = vst.msk [vmem:[#allocation2 + $0x78] sm:$0xff] %vm251_vm2, %v563_v4  ;;  %v957_v4 = vld [vmem:[%s3501_s2 + $0x70] sm:$0xff] }
 0x116   : > { %996 = vmatpush.msra.mxu1 %v957_v4 }
 0x118   : > { %v500_v5 = vpop.f32.mrf.mxu0  ;;  %997 = vmatpush.msra.mxu1 %v956_v23  ;;  %v1211_v23 = vld [vmem:[%s3501_s2 + $0xc0] sm:$0xff] }
 0x119   : > { %v501_v6 = vadd.f32 %v2578_v20, %v500_v5 }
 0x11b   : > { %v564_v12 = vmax.f32 %v501_v6, 0.0 }
 0x11c   : > { %v650_v13 = vld [vmem:[#allocation2 + $0x70] ss:$2 sm:$0xff]  ;;  %v666_v14 = vld [vmem:[#allocation2 + $0x71] ss:$2 sm:$0xff] }
 0x11d   : > { %v686_v17 = vmax.f32 %v650_v13, %v666_v14  ;;  %596 = vst.msk [vmem:[#allocation2 + $0x80] sm:$0xff] %vm251_vm2, %v564_v12 }
 0x11f   : > { %v694_v22 = vmax.f32 %v678_v16, %v686_v17 }
 0x120   : > { %v503_v24 = vpop.f32.mrf.mxu0 }
 0x121   : > { %v504_v27 = vadd.f32 %v2578_v20, %v503_v24  ;;  %703 = vst.msk [vmem:[#allocation3 + $0x41] sm:$0xff] %vm251_vm2, %v694_v22  ;;  %v1126_v22 = vld [vmem:[%s3501_s2 + $0xa8] sm:$0xff]  ;;  %v1040_v24 = vld [vmem:[%s3501_s2 + $0x80] sm:$0xff] }
 0x122   : > { %1167 = vmatpush.msrb.mxu3 %v1126_v22  ;;  %1083 = vmatpush.msra.mxu2 %v1040_v24  ;;  %v1381_v22 = vld [vmem:[%s3501_s2 + $0x100] sm:$0xff]  ;;  %v2961_v24 = vpop.f32.mrf.mxu1 }
 0x123   : > { %v565_v28 = vmax.f32 %v504_v27, 0.0  ;;  %v955_v27 = vld [vmem:[%s3501_s2 + $0x60] sm:$0xff] }
 0x124   : > { %1168 = vmatpush.msrb.mxu3 %v1125_v26  ;;  %998 = vmatpush.msra.mxu1 %v955_v27  ;;  %v2963_v26 = vpop.f32.mrf.mxu2  ;;  %v2967_v27 = vpop.f32.mrf.mxu3 }
 0x125   : > { %597 = vst.msk [vmem:[#allocation2 + $0x88] sm:$0xff] %vm251_vm2, %v565_v28 }
 0x128   : > { %v506_v29 = vpop.f32.mrf.mxu0  ;;  %v2779_v30 = vld [vmem:[#allocation3 + $0x41] sm:$0xff] }
 0x129   : > { %v2781_v31 = vld [vmem:[#allocation3 + $0x40] sm:$0xff]  ;;  %v507_v33 = vadd.f32 %v2578_v20, %v506_v29  ;;  %2238 = vmatmul.msk.f32.gmra.mxu1 %vm251_vm2, %v2779_v30 }
 0x12a   : > { %v2783_v32 = vld [vmem:[#allocation3 + $0x42] sm:$0xff]  ;;  %2246 = vmatmul.msk.f32.gmra.mxu2 %vm251_vm2, %v2781_v31 }
 0x12b   : > { %2254 = vmatmul.msk.f32.gmra.mxu3 %vm251_vm2, %v2783_v32  ;;  %v566_v34 = vmax.f32 %v507_v33, 0.0 }
 0x12c   : > { %v620_v43 = vld [vmem:[#allocation2 + $0x80] ss:$2 sm:$0xff]  ;;  %v636_v44 = vld [vmem:[#allocation2 + $0x81] ss:$2 sm:$0xff] }
 0x12d   : > { %598 = vst.msk [vmem:[#allocation2 + $0x90] sm:$0xff] %vm251_vm2, %v566_v34  ;;  %v679_v48 = vmax.f32 %v620_v43, %v636_v44 }
 0x130   : > { %v509_v35 = vpop.f32.mrf.mxu0 }
 0x131   : > { %v510_v39 = vadd.f32 %v2578_v20, %v509_v35 }
 0x133   : > { %v567_v40 = vmax.f32 %v510_v39, 0.0 }
 0x135   : > { %599 = vst.msk [vmem:[#allocation2 + $0x98] sm:$0xff] %vm251_vm2, %v567_v40 }
 0x138   : > { %v512_v41 = vpop.f32.mrf.mxu0 }
 0x139   : > { %v513_v42 = vadd.f32 %v2578_v20, %v512_v41 }
 0x13b   : > { %v568_v45 = vmax.f32 %v513_v42, 0.0 }
 0x13c   : > { %v652_v46 = vld [vmem:[#allocation2 + $0x90] ss:$2 sm:$0xff]  ;;  %v668_v47 = vld [vmem:[#allocation2 + $0x91] ss:$2 sm:$0xff] }
 0x13d   : > { %v687_v49 = vmax.f32 %v652_v46, %v668_v47  ;;  %600 = vst.msk [vmem:[#allocation2 + $0xa0] sm:$0xff] %vm251_vm2, %v568_v45  ;;  %v1299_v46 = vld [vmem:[%s3501_s2 + $0xf8] sm:$0xff] }
 0x13e   : > { %v1384_v47 = vld [vmem:[%s3501_s2 + $0x118] sm:$0xff]  ;;  %1336 = vmatpush.msrb.mxu2 %v1299_v46 }
 0x13f   : > { %v695_v53 = vmax.f32 %v679_v48, %v687_v49  ;;  %v1214_v48 = vld [vmem:[%s3501_s2 + $0xd8] sm:$0xff]  ;;  %1421 = vmatpush.msra.mxu3 %v1384_v47 }
 0x140   : > { %v515_v54 = vpop.f32.mrf.mxu0  ;;  %1251 = vmatpush.msrb.mxu1 %v1214_v48 }
 0x141   : > { %v516_v55 = vadd.f32 %v2578_v20, %v515_v54  ;;  %704 = vst.msk [vmem:[#allocation3 + $0x51] sm:$0xff] %vm251_vm2, %v695_v53  ;;  %1422 = vmatpush.msra.mxu3 %v1383_v2 }
 0x142   : > { %1252 = vmatpush.msrb.mxu1 %v1213_v3 }
 0x143   : > { %v569_v56 = vmax.f32 %v516_v55, 0.0 }
 0x145   : > { %601 = vst.msk [vmem:[#allocation2 + $0xa8] sm:$0xff] %vm251_vm2, %v569_v56 }
 0x148   : > { %v518_v57 = vpop.f32.mrf.mxu0  ;;  %v2809_v58 = vld [vmem:[#allocation3 + $0x51] sm:$0xff] }
 0x149   : > { %v2811_v59 = vld [vmem:[#allocation3 + $0x50] sm:$0xff]  ;;  %v519_v0 = vadd.f32 %v2578_v20, %v518_v57  ;;  %2239 = vmatmul.msk.f32.gmra.mxu1 %vm251_vm2, %v2809_v58 }
 0x14a   : > { %v2813_v63 = vld [vmem:[#allocation3 + $0x52] sm:$0xff]  ;;  %2247 = vmatmul.msk.f32.gmra.mxu2 %vm251_vm2, %v2811_v59 }
 0x14b   : > { %2255 = vmatmul.msk.f32.gmra.mxu3 %vm251_vm2, %v2813_v63  ;;  %v570_v1 = vmax.f32 %v519_v0, 0.0 }
 0x14c   : > { %v622_v13 = vld [vmem:[#allocation2 + $0xa0] ss:$2 sm:$0xff]  ;;  %v638_v14 = vld [vmem:[#allocation2 + $0xa1] ss:$2 sm:$0xff] }
 0x14d   : > { %602 = vst.msk [vmem:[#allocation2 + $0xb0] sm:$0xff] %vm251_vm2, %v570_v1  ;;  %v680_v18 = vmax.f32 %v622_v13, %v638_v14  ;;  %v1298_v1 = vld [vmem:[%s3501_s2 + $0xf0] sm:$0xff]  ;;  %v658_v14 = vld [vmem:[#allocation2 + $0xf0] ss:$2 sm:$0xff] }
 0x14e   : > { %1337 = vmatpush.msrb.mxu2 %v1298_v1 }
 0x150   : > { %v521_v5 = vpop.f32.mrf.mxu0 }
 0x151   : > { %v522_v6 = vadd.f32 %v2578_v20, %v521_v5 }
 0x153   : > { %v571_v7 = vmax.f32 %v522_v6, 0.0 }
 0x155   : > { %603 = vst.msk [vmem:[#allocation2 + $0xb8] sm:$0xff] %vm251_vm2, %v571_v7 }
 0x158   : > { %v524_v11 = vpop.f32.mrf.mxu0 }
 0x159   : > { %v525_v12 = vadd.f32 %v2578_v20, %v524_v11 }
 0x15b   : > { %v572_v15 = vmax.f32 %v525_v12, 0.0 }
 0x15c   : > { %v654_v16 = vld [vmem:[#allocation2 + $0xb0] ss:$2 sm:$0xff]  ;;  %v670_v17 = vld [vmem:[#allocation2 + $0xb1] ss:$2 sm:$0xff] }
 0x15d   : > { %v688_v19 = vmax.f32 %v654_v16, %v670_v17  ;;  %604 = vst.msk [vmem:[#allocation2 + $0xc0] sm:$0xff] %vm251_vm2, %v572_v15  ;;  %v674_v15 = vld [vmem:[#allocation2 + $0xf1] ss:$2 sm:$0xff]  ;;  %v1297_v16 = vld [vmem:[%s3501_s2 + $0xe8] sm:$0xff] }
 0x15e   : > { %v1212_v17 = vld [vmem:[%s3501_s2 + $0xc8] sm:$0xff]  ;;  %1338 = vmatpush.msrb.mxu2 %v1297_v16 }
 0x15f   : > { %v696_v28 = vmax.f32 %v680_v18, %v688_v19  ;;  %1253 = vmatpush.msrb.mxu1 %v1212_v17  ;;  %v839_v17 = vadd.f32 %v2963_v26, %v2961_v24 }
 0x160   : > { %v527_v29 = vpop.f32.mrf.mxu0  ;;  %1339 = vmatpush.msrb.mxu2 %v1296_v21 }
 0x161   : > { %v528_v33 = vadd.f32 %v2578_v20, %v527_v29  ;;  %705 = vst.msk [vmem:[#allocation3 + $0x61] sm:$0xff] %vm251_vm2, %v696_v28  ;;  %1254 = vmatpush.msrb.mxu1 %v1211_v23  ;;  %v2975_v28 = vpop.f32.mrf.mxu1  ;;  %v2977_v29 = vpop.f32.mrf.mxu2 }
 0x162   : > { %v842_v21 = vadd.f32 %v2977_v29, %v2975_v28  ;;  %v1556_v29 = vld [vmem:[%s3502_s3 + $0x70] sm:$0xff] }
 0x163   : > { %v573_v34 = vmax.f32 %v528_v33, 0.0  ;;  %v2979_v33 = vpop.f32.mrf.mxu3 }
 0x164   : > { %v940_v26 = vadd.f32 %v2979_v33, %v842_v21  ;;  %v1551_v21 = vld [vmem:[%s3502_s3 + $0x48] sm:$0xff] }
 0x165   : > { %605 = vst.msk [vmem:[#allocation2 + $0xc8] sm:$0xff] %vm251_vm2, %v573_v34 }
 0x168   : > { %v530_v35 = vpop.f32.mrf.mxu0  ;;  %v2857_v39 = vld [vmem:[#allocation3 + $0x61] sm:$0xff] }
 0x169   : > { %v2859_v40 = vld [vmem:[#allocation3 + $0x60] sm:$0xff]  ;;  %v531_v42 = vadd.f32 %v2578_v20, %v530_v35  ;;  %2240 = vmatmul.msk.f32.gmra.mxu1 %vm251_vm2, %v2857_v39 }
 0x16a   : > { %v2861_v41 = vld [vmem:[#allocation3 + $0x62] sm:$0xff]  ;;  %2248 = vmatmul.msk.f32.gmra.mxu2 %vm251_vm2, %v2859_v40 }
 0x16b   : > { %2256 = vmatmul.msk.f32.gmra.mxu3 %vm251_vm2, %v2861_v41  ;;  %v574_v43 = vmax.f32 %v531_v42, 0.0 }
 0x16c   : > { %v624_v50 = vld [vmem:[#allocation2 + $0xc0] ss:$2 sm:$0xff]  ;;  %v640_v51 = vld [vmem:[#allocation2 + $0xc1] ss:$2 sm:$0xff] }
 0x16d   : > { %606 = vst.msk [vmem:[#allocation2 + $0xd0] sm:$0xff] %vm251_vm2, %v574_v43  ;;  %v681_v54 = vmax.f32 %v624_v50, %v640_v51  ;;  %v2984_v43 = vpop.f32.mrf.mxu1 }
 0x170   : > { %v533_v44 = vpop.f32.mrf.mxu0 }
 0x171   : > { %v534_v45 = vadd.f32 %v2578_v20, %v533_v44  ;;  %v2986_v44 = vpop.f32.mrf.mxu2 }
 0x172   : > { %v845_v33 = vadd.f32 %v2986_v44, %v2984_v43  ;;  %v1554_v44 = vld [vmem:[%s3502_s3 + $0x60] sm:$0xff] }
 0x173   : > { %v575_v49 = vmax.f32 %v534_v45, 0.0  ;;  %v2988_v45 = vpop.f32.mrf.mxu3 }
 0x175   : > { %607 = vst.msk [vmem:[#allocation2 + $0xd8] sm:$0xff] %vm251_vm2, %v575_v49 }
 0x178   : > { %v536_v57 = vpop.f32.mrf.mxu0 }
 0x179   : > { %v537_v0 = vadd.f32 %v2578_v20, %v536_v57 }
 0x17b   : > { %v576_v4 = vmax.f32 %v537_v0, 0.0 }
 0x17c   : > { %v656_v52 = vld [vmem:[#allocation2 + $0xd0] ss:$2 sm:$0xff]  ;;  %v672_v53 = vld [vmem:[#allocation2 + $0xd1] ss:$2 sm:$0xff] }
 0x17d   : > { %v689_v55 = vmax.f32 %v656_v52, %v672_v53  ;;  %608 = vst.msk [vmem:[#allocation2 + $0xe0] sm:$0xff] %vm251_vm2, %v576_v4 }
 0x17f   : > { %v697_v56 = vmax.f32 %v681_v54, %v689_v55 }
 0x180   : > { %v539_v11 = vpop.f32.mrf.mxu0 }
 0x181   : > { %706 = vst.msk [vmem:[#allocation3 + $0x71] sm:$0xff] %vm251_vm2, %v697_v56  ;;  %v540_v12 = vadd.f32 %v2578_v20, %v539_v11  ;;  %v1382_v20 = vld [vmem:[%s3501_s2 + $0x108] sm:$0xff] }
 0x182   : > { %1423 = vmatpush.msra.mxu3 %v1382_v20 }
 0x183   : > { %v577_v13 = vmax.f32 %v540_v12, 0.0 }
 0x184   : > { %1424 = vmatpush.msra.mxu3 %v1381_v22 }
 0x185   : > { %609 = vst.msk [vmem:[#allocation2 + $0xe8] sm:$0xff] %vm251_vm2, %v577_v13 }
 0x186   : > { %v2996_v46 = vpop.f32.mrf.mxu1 }
 0x188   : > { %v2894_v5 = vld [vmem:[#allocation3 + $0x71] sm:$0xff] }
 0x189   : > { %v2896_v6 = vld [vmem:[#allocation3 + $0x70] sm:$0xff]  ;;  %2241 = vmatmul.msk.f32.gmra.mxu1 %vm251_vm2, %v2894_v5 }
 0x18a   : > { %v2898_v7 = vld [vmem:[#allocation3 + $0x72] sm:$0xff]  ;;  %2249 = vmatmul.msk.f32.gmra.mxu2 %vm251_vm2, %v2896_v6 }
 0x18b   : > { %2257 = vmatmul.msk.f32.gmra.mxu3 %vm251_vm2, %v2898_v7 }
 0x18c   : > { %v642_v18 = vld [vmem:[#allocation2 + $0xe1] ss:$2 sm:$0xff] }
 0x18d   : > { %v2998_v47 = vpop.f32.mrf.mxu2 }
 0x18e   : > { %v3000_v48 = vpop.f32.mrf.mxu3 }
 0x191   : > { %2258 = vmatmul.msk.f32.vlgmr.msra.gmra.mxu1 %vm251_vm2, %v2699_v9  ;;  %v690_v9 = vmax.f32 %v658_v14, %v674_v15 }
 0x192   : > { %2266 = vmatmul.msk.f32.vlgmr.msra.gmra.mxu2 %vm251_vm2, %v2697_v8  ;;  %v626_v8 = vld [vmem:[#allocation2 + $0xe0] ss:$2 sm:$0xff] }
 0x193   : > { %2274 = vmatmul.msk.f32.vlgmr.msrb.gmra.mxu3 %vm251_vm2, %v2701_v10  ;;  %v682_v19 = vmax.f32 %v626_v8, %v642_v18  ;;  %v939_v18 = vadd.f32 %v2967_v27, %v839_v17 }
 0x195   : > { %v698_v10 = vmax.f32 %v682_v19, %v690_v9 }
 0x197   : > { %707 = vst.msk [vmem:[#allocation3 + $0x81] sm:$0xff] %vm251_vm2, %v698_v10 }
 0x199   : > { %2259 = vmatmul.msk.f32.gmra.mxu1 %vm251_vm2, %v2728_v37 }
 0x19a   : > { %2267 = vmatmul.msk.f32.gmra.mxu2 %vm251_vm2, %v2726_v36 }
 0x19b   : > { %2275 = vmatmul.msk.f32.gmra.mxu3 %vm251_vm2, %v2730_v38 }
 0x19e   : > { %v954_v34 = vld [vmem:[#allocation3 + $0x80] sm:$0xff] }
 0x19f   : > { %v1039_v35 = vld [vmem:[#allocation3 + $0x81] sm:$0xff] }
 0x1a0   : > { %v1124_v42 = vld [vmem:[#allocation3 + $0x82] sm:$0xff] }
 0x1a1   : > { %2260 = vmatmul.msk.f32.gmra.mxu1 %vm251_vm2, %v2754_v61 }
 0x1a2   : > { %2268 = vmatmul.msk.f32.gmra.mxu2 %vm251_vm2, %v2752_v60 }
 0x1a3   : > { %2276 = vmatmul.msk.f32.gmra.mxu3 %vm251_vm2, %v2756_v62 }
 0x1a9   : > { %2261 = vmatmul.msk.f32.gmra.mxu1 %vm251_vm2, %v2781_v31 }
 0x1aa   : > { %2269 = vmatmul.msk.f32.gmra.mxu2 %vm251_vm2, %v2779_v30 }
 0x1ab   : > { %2277 = vmatmul.msk.f32.gmra.mxu3 %vm251_vm2, %v2783_v32 }
 0x1b1   : > { %2262 = vmatmul.msk.f32.gmra.mxu1 %vm251_vm2, %v2811_v59 }
 0x1b2   : > { %2270 = vmatmul.msk.f32.gmra.mxu2 %vm251_vm2, %v2809_v58 }
 0x1b3   : > { %2278 = vmatmul.msk.f32.gmra.mxu3 %vm251_vm2, %v2813_v63 }
 0x1b9   : > { %2263 = vmatmul.msk.f32.gmra.mxu1 %vm251_vm2, %v2859_v40 }
 0x1ba   : > { %2271 = vmatmul.msk.f32.gmra.mxu2 %vm251_vm2, %v2857_v39 }
 0x1bb   : > { %2279 = vmatmul.msk.f32.gmra.mxu3 %vm251_vm2, %v2861_v41 }
 0x1c1   : > { %2264 = vmatmul.msk.f32.gmra.mxu1 %vm251_vm2, %v2896_v6 }
 0x1c2   : > { %2272 = vmatmul.msk.f32.gmra.mxu2 %vm251_vm2, %v2894_v5 }
 0x1c3   : > { %2280 = vmatmul.msk.f32.gmra.mxu3 %vm251_vm2, %v2898_v7 }
 0x1c9   : > { %2265 = vmatmul.msk.f32.gmra.mxu1 %vm251_vm2, %v954_v34 }
 0x1ca   : > { %2273 = vmatmul.msk.f32.gmra.mxu2 %vm251_vm2, %v1039_v35 }
 0x1cb   : > { %2281 = vmatmul.msk.f32.gmra.mxu3 %vm251_vm2, %v1124_v42 }
 0x1d1   : > { %2282 = vmatmul.msk.f32.vlgmr.msrb.gmra.mxu1 %vm251_vm2, %v2728_v37  ;;  %v3008_v37 = vpop.f32.mrf.mxu1 }
 0x1d2   : > { %2290 = vmatmul.msk.f32.vlgmr.msrb.gmra.mxu2 %vm251_vm2, %v2726_v36  ;;  %v3010_v36 = vpop.f32.mrf.mxu2 }
 0x1d3   : > { %2298 = vmatmul.msk.f32.vlgmr.msra.gmra.mxu3 %vm251_vm2, %v2730_v38  ;;  %v3012_v38 = vpop.f32.mrf.mxu3 }
 0x1d9   : > { %2283 = vmatmul.msk.f32.gmra.mxu1 %vm251_vm2, %v2754_v61  ;;  %v3020_v61 = vpop.f32.mrf.mxu1 }
 0x1da   : > { %2291 = vmatmul.msk.f32.gmra.mxu2 %vm251_vm2, %v2752_v60  ;;  %v3022_v60 = vpop.f32.mrf.mxu2 }
 0x1db   : > { %2299 = vmatmul.msk.f32.gmra.mxu3 %vm251_vm2, %v2756_v62  ;;  %v3024_v62 = vpop.f32.mrf.mxu3 }
 0x1e1   : > { %2284 = vmatmul.msk.f32.gmra.mxu1 %vm251_vm2, %v2781_v31 }
 0x1e2   : > { %2292 = vmatmul.msk.f32.gmra.mxu2 %vm251_vm2, %v2779_v30 }
 0x1e3   : > { %2300 = vmatmul.msk.f32.gmra.mxu3 %vm251_vm2, %v2783_v32 }
 0x1e6   : > { %v791_v31 = vpop.f32.mrf.mxu1 }
 0x1e9   : > { %2285 = vmatmul.msk.f32.gmra.mxu1 %vm251_vm2, %v2811_v59  ;;  %v1210_v59 = vld [vmem:[#allocation3 + $0x90] sm:$0xff] }
 0x1ea   : > { %2293 = vmatmul.msk.f32.gmra.mxu2 %vm251_vm2, %v2809_v58 }
 0x1eb   : > { %2301 = vmatmul.msk.f32.gmra.mxu3 %vm251_vm2, %v2813_v63  ;;  %v1295_v63 = vld [vmem:[#allocation3 + $0x91] sm:$0xff] }
 0x1ed   : > { %v856_v30 = vpop.f32.mrf.mxu2 }
 0x1ee   : > { %v857_v49 = vadd.f32 %v856_v30, %v791_v31  ;;  %v933_v50 = vpop.f32.mrf.mxu3 }
 0x1f0   : > { %v3032_v32 = vadd.f32 %v933_v50, %v857_v49  ;;  %v3127_v50 = vld [vmem:[%s3504_s5 + $0x1] ss:$0 sm:$0xff] }
 0x1f1   : > { %2286 = vmatmul.msk.f32.gmra.mxu1 %vm251_vm2, %v2859_v40 }
 0x1f2   : > { %2294 = vmatmul.msk.f32.gmra.mxu2 %vm251_vm2, %v2857_v39  ;;  %v1380_v39 = vld [vmem:[#allocation3 + $0x92] sm:$0xff] }
 0x1f3   : > { %2302 = vmatmul.msk.f32.gmra.mxu3 %vm251_vm2, %v2861_v41 }
 0x1f9   : > { %2287 = vmatmul.msk.f32.gmra.mxu1 %vm251_vm2, %v2896_v6 }
 0x1fa   : > { %2295 = vmatmul.msk.f32.gmra.mxu2 %vm251_vm2, %v2894_v5 }
 0x1fb   : > { %2303 = vmatmul.msk.f32.gmra.mxu3 %vm251_vm2, %v2898_v7 }
 0x201   : > { %2288 = vmatmul.msk.f32.gmra.mxu1 %vm251_vm2, %v954_v34  ;;  %v1557_v34 = vld [vmem:[%s3502_s3 + $0x78] sm:$0xff] }
 0x202   : > { %2296 = vmatmul.msk.f32.gmra.mxu2 %vm251_vm2, %v1039_v35  ;;  %1583 = vmatpush.msra.mxu1 %v1557_v34  ;;  %v1649_v34 = vld [vmem:[%s3502_s3 + $0xb8] sm:$0xff] }
 0x203   : > { %2304 = vmatmul.msk.f32.gmra.mxu3 %vm251_vm2, %v1124_v42 }
 0x204   : > { %1584 = vmatpush.msra.mxu1 %v1556_v29  ;;  %1675 = vmatpush.msrb.mxu3 %v1649_v34 }
 0x206   : > { %v794_v58 = vpop.f32.mrf.mxu1 }
 0x209   : > { %2289 = vmatmul.msk.f32.gmra.mxu1 %vm251_vm2, %v1210_v59  ;;  %v1555_v59 = vld [vmem:[%s3502_s3 + $0x68] sm:$0xff] }
 0x20a   : > { %2297 = vmatmul.msk.f32.gmra.mxu2 %vm251_vm2, %v1295_v63  ;;  %1585 = vmatpush.msra.mxu1 %v1555_v59  ;;  %v941_v63 = vadd.f32 %v2988_v45, %v845_v33  ;;  %v1538_v59 = vld [vmem:[%s3502_s3] sm:$0xff] }
 0x20b   : > { %2305 = vmatmul.msk.f32.gmra.mxu3 %vm251_vm2, %v1380_v39 }
 0x20c   : > { %1586 = vmatpush.msra.mxu1 %v1554_v44 }
 0x20d   : > { %v859_v40 = vpop.f32.mrf.mxu2 }
 0x20e   : > { %v860_v41 = vadd.f32 %v859_v40, %v794_v58  ;;  %v936_v51 = vpop.f32.mrf.mxu3  ;;  %v1000_v52 = vpop.f32.mrf.mxu1  ;;  %1587 = vmatpush.msra.mxu1 %v1553_v25 }
 0x20f   : > { %v1024_v19 = vadd.f32 %v1000_v52, %v939_v18 }
 0x210   : > { %v3052_v53 = vadd.f32 %v936_v51, %v860_v41  ;;  %v1546_v41 = vld [vmem:[#allocation5 + $0x1] sm:$0xf]  ;;  %v1545_v51 = vld [vmem:[%s3502_s3 + $0x38] sm:$0xff] }
 0x211   : > { %1562 = vst [vmem:[#allocation1] ss:$2 sm:$0xff] %v1546_v41  ;;  %1623 = vmatpush.msra.mxu2 %v1545_v51 }
 0x215   : > { %v1085_v54 = vpop.f32.mrf.mxu2 }
 0x216   : > { %v1170_v55 = vpop.f32.mrf.mxu3  ;;  %v1003_v56 = vpop.f32.mrf.mxu1  ;;  %v1109_v22 = vadd.f32 %v1085_v54, %v1024_v19 }
 0x217   : > { %v1025_v35 = vadd.f32 %v1003_v56, %v940_v26  ;;  %v1552_v56 = vld [vmem:[%s3502_s3 + $0x50] sm:$0xff] }
 0x218   : > { %v1194_v27 = vadd.f32 %v1170_v55, %v1109_v22  ;;  %1588 = vmatpush.msra.mxu1 %v1552_v56  ;;  %v1543_v22 = vld [vmem:[%s3502_s3 + $0x28] sm:$0xff] }
 0x21a   : > { %1589 = vmatpush.msra.mxu1 %v1551_v21 }
 0x21d   : > { %v1088_v57 = vpop.f32.mrf.mxu2 }
 0x21e   : > { %v1173_v0 = vpop.f32.mrf.mxu3  ;;  %v3054_v1 = vpop.f32.mrf.mxu1  ;;  %v1110_v31 = vadd.f32 %v1088_v57, %v1025_v35  ;;  %v1544_v57 = vld [vmem:[%s3502_s3 + $0x30] sm:$0xff]  ;;  %v1541_v35 = vld [vmem:[%s3502_s3 + $0x18] sm:$0xff] }
 0x21f   : > { %v1026_v52 = vadd.f32 %v3054_v1, %v941_v63  ;;  %1624 = vmatpush.msra.mxu2 %v1544_v57 }
 0x220   : > { %v1195_v39 = vadd.f32 %v1173_v0, %v1110_v31  ;;  %v848_v0 = vadd.f32 %v2998_v47, %v2996_v46  ;;  %v1550_v46 = vld [vmem:[%s3502_s3 + $0x40] sm:$0xff] }
 0x221   : > { %1625 = vmatpush.msra.mxu2 %v1543_v22  ;;  %v1542_v47 = vld [vmem:[%s3502_s3 + $0x20] sm:$0xff]  ;;  %1590 = vmatpush.msra.mxu1 %v1550_v46 }
 0x223   : > { %1626 = vmatpush.msra.mxu2 %v1542_v47 }
 0x225   : > { %v3056_v2 = vpop.f32.mrf.mxu2  ;;  %1627 = vmatpush.msra.mxu2 %v1541_v35 }
 0x226   : > { %v3058_v3 = vpop.f32.mrf.mxu3  ;;  %v3060_v4 = vpop.f32.mrf.mxu1  ;;  %v1111_v17 = vadd.f32 %v3056_v2, %v1026_v52  ;;  %v942_v2 = vadd.f32 %v3000_v48, %v848_v0 }
 0x228   : > { %v1196_v26 = vadd.f32 %v3058_v3, %v1111_v17  ;;  %v851_v3 = vadd.f32 %v3010_v36, %v3008_v37  ;;  %v1539_v37 = vld [vmem:[%s3502_s3 + $0x8] sm:$0xff] }
 0x229   : > { %v1647_v36 = vld [vmem:[%s3502_s3 + $0xa8] sm:$0xff] }
 0x22a   : > { %v943_v44 = vadd.f32 %v3012_v38, %v851_v3 }
 0x22d   : > { %v3062_v5 = vpop.f32.mrf.mxu2 }
 0x22e   : > { %v3064_v6 = vpop.f32.mrf.mxu3  ;;  %v3066_v7 = vpop.f32.mrf.mxu1 }
 0x22f   : > { %v1028_v51 = vadd.f32 %v3066_v7, %v943_v44 }
 0x235   : > { %v3068_v11 = vpop.f32.mrf.mxu2 }
 0x236   : > { %v3070_v12 = vpop.f32.mrf.mxu3  ;;  %v3072_v13 = vpop.f32.mrf.mxu1  ;;  %v1113_v56 = vadd.f32 %v3068_v11, %v1028_v51  ;;  %v1701_v51 = vld [vmem:[%s3502_s3 + $0xe8] sm:$0xff] }
 0x238   : > { %v1198_v21 = vadd.f32 %v3070_v12, %v1113_v56 }
 0x23d   : > { %v3074_v14 = vpop.f32.mrf.mxu2 }
 0x23e   : > { %v3076_v15 = vpop.f32.mrf.mxu3  ;;  %v3078_v16 = vpop.f32.mrf.mxu1 }
 0x245   : > { %v3080_v20 = vpop.f32.mrf.mxu2 }
 0x246   : > { %v3084_v9 = vpop.f32.mrf.mxu3  ;;  %v3086_v8 = vpop.f32.mrf.mxu1 }
 0x24d   : > { %v3101_v10 = vpop.f32.mrf.mxu2 }
 0x24e   : > { %v3107_v23 = vpop.f32.mrf.mxu3  ;;  %v1256_v24 = vpop.f32.mrf.mxu1 }
 0x24f   : > { %v1280_v42 = vadd.f32 %v1256_v24, %v1194_v27 }
 0x255   : > { %v1341_v28 = vpop.f32.mrf.mxu2 }
 0x256   : > { %v1365_v30 = vadd.f32 %v1341_v28, %v1280_v42  ;;  %v1426_v49 = vpop.f32.mrf.mxu3  ;;  %v1259_v58 = vpop.f32.mrf.mxu1  ;;  %v1027_v42 = vadd.f32 %v3060_v4, %v942_v2  ;;  %v1540_v4 = vld [vmem:[%s3502_s3 + $0x10] sm:$0xff] }
 0x257   : > { %v1281_v55 = vadd.f32 %v1259_v58, %v1195_v39  ;;  %1628 = vmatpush.msra.mxu2 %v1540_v4 }
 0x258   : > { %v1450_v43 = vadd.f32 %v1426_v49, %v1365_v30  ;;  %v1112_v33 = vadd.f32 %v3062_v5, %v1027_v42  ;;  %v1648_v49 = vld [vmem:[%s3502_s3 + $0xb0] sm:$0xff] }
 0x259   : > { %1676 = vmatpush.msrb.mxu3 %v1648_v49  ;;  %1629 = vmatpush.msra.mxu2 %v1539_v37 }
 0x25a   : > { %v1460_v40 = vadd.f32 %v3127_v50, %v1450_v43  ;;  %v1646_v43 = vld [vmem:[%s3502_s3 + $0xa0] sm:$0xff]  ;;  %v1197_v63 = vadd.f32 %v3064_v6, %v1112_v33 }
 0x25b   : > { %1677 = vmatpush.msrb.mxu3 %v1647_v36  ;;  %1630 = vmatpush.msra.mxu2 %v1538_v59  ;;  %v1703_v59 = vld [vmem:[%s3502_s3 + $0xf8] sm:$0xff] }
 0x25c   : > { %v1468_v54 = vmax.f32 %v1460_v40, 0.0  ;;  %1729 = vmatpush.msrb.mxu1 %v1703_v59 }
 0x25d   : > { %v1344_v45 = vpop.f32.mrf.mxu2  ;;  %1678 = vmatpush.msrb.mxu3 %v1646_v43 }
 0x25e   : > { %1477 = vst.msk [vmem:[#allocation4] sm:$0xff] %vm1476_vm7, %v1468_v54  ;;  %v1366_v1 = vadd.f32 %v1344_v45, %v1281_v55  ;;  %v1429_v18 = vpop.f32.mrf.mxu3  ;;  %v1262_v19 = vpop.f32.mrf.mxu1  ;;  %v1645_v54 = vld [vmem:[%s3502_s3 + $0x98] sm:$0xff]  ;;  %v854_v55 = vadd.f32 %v3022_v60, %v3020_v61 }
 0x25f   : > { %v1282_v29 = vadd.f32 %v1262_v19, %v1196_v26  ;;  %1679 = vmatpush.msrb.mxu3 %v1645_v54  ;;  %v1643_v19 = vld [vmem:[%s3502_s3 + $0x88] sm:$0xff] }
 0x260   : > { %v1451_v24 = vadd.f32 %v1429_v18, %v1366_v1  ;;  %v1644_v1 = vld [vmem:[%s3502_s3 + $0x90] sm:$0xff]  ;;  %v944_v11 = vadd.f32 %v3024_v62, %v854_v55  ;;  %v1700_v55 = vld [vmem:[%s3502_s3 + $0xe0] sm:$0xff] }
 0x261   : > { %1680 = vmatpush.msrb.mxu3 %v1644_v1 }
 0x262   : > { %v1461_v27 = vadd.f32 %v3127_v50, %v1451_v24  ;;  %v1642_v24 = vld [vmem:[%s3502_s3 + $0x80] sm:$0xff]  ;;  %v1029_v46 = vadd.f32 %v3072_v13, %v944_v11  ;;  %v1030_v13 = vadd.f32 %v3078_v16, %v3032_v32  ;;  %v1534_v16 = vld [vmem:[#allocation5] sm:$0xf] }
 0x263   : > { %1681 = vmatpush.msrb.mxu3 %v1643_v19  ;;  %v1697_v11 = vld [vmem:[%s3502_s3 + $0xc8] sm:$0xff] }
 0x264   : > { %v1469_v28 = vmax.f32 %v1461_v27, 0.0  ;;  %v1114_v27 = vadd.f32 %v3074_v14, %v1029_v46  ;;  %v1115_v4 = vadd.f32 %v3080_v20, %v1030_v13  ;;  %v1702_v20 = vld [vmem:[%s3502_s3 + $0xf0] sm:$0xff]  ;;  %v2077_v13 = vld [vmem:[%s3503_s4 + $0x68] sm:$0xff] }
 0x265   : > { %v1347_v48 = vpop.f32.mrf.mxu2  ;;  %v1485_v40 = vld [vmem:[#allocation4] ss:$2 sm:$0xf]  ;;  %v1493_v41 = vld [vmem:[#allocation4 + $0x1] ss:$2 sm:$0xf]  ;;  %1682 = vmatpush.msrb.mxu3 %v1642_v24  ;;  %1730 = vmatpush.msrb.mxu1 %v1702_v20 }
 0x266   : > { %1478 = vst.msk [vmem:[#allocation4 + $0x8] sm:$0xff] %vm1476_vm7, %v1469_v28  ;;  %v1367_v31 = vadd.f32 %v1347_v48, %v1282_v29  ;;  %v1432_v30 = vpop.f32.mrf.mxu3  ;;  %v1265_v58 = vpop.f32.mrf.mxu1  ;;  %v1516_v57 = vmax.f32 %v1485_v40, %v1493_v41  ;;  %v1199_v28 = vadd.f32 %v3076_v15, %v1114_v27  ;;  %v2079_v41 = vld [vmem:[%s3503_s4 + $0x78] sm:$0xff] }
 0x267   : > { %v1283_v52 = vadd.f32 %v1265_v58, %v1197_v63  ;;  %2081 = vmatpush.msrb.mxu0 %v2079_v41  ;;  %1731 = vmatpush.msrb.mxu1 %v1701_v51  ;;  %v1804_v41 = vld [vmem:[%s3502_s3 + $0x140] sm:$0xff] }
 0x268   : > { %v1452_v5 = vadd.f32 %v1432_v30, %v1367_v31 }
 0x269   : > { %1732 = vmatpush.msrb.mxu1 %v1700_v55  ;;  %v1862_v55 = vld [vmem:[%s3502_s3 + $0x198] sm:$0xff] }
 0x26a   : > { %v1462_v39 = vadd.f32 %v3127_v50, %v1452_v5 }
 0x26c   : > { %v1470_v25 = vmax.f32 %v1462_v39, 0.0  ;;  %v1200_v39 = vadd.f32 %v3084_v9, %v1115_v4  ;;  %v1031_v9 = vadd.f32 %v3086_v8, %v3052_v53  ;;  %v1699_v8 = vld [vmem:[%s3502_s3 + $0xd8] sm:$0xff]  ;;  %v1750_v4 = vld [vmem:[%s3502_s3 + $0x100] sm:$0xff] }
 0x26d   : > { %v1501_v38 = vld [vmem:[#allocation4 + $0x8] ss:$2 sm:$0xf]  ;;  %v1509_v45 = vld [vmem:[#allocation4 + $0x9] ss:$2 sm:$0xf]  ;;  %v1350_v6 = vpop.f32.mrf.mxu2  ;;  %1733 = vmatpush.msrb.mxu1 %v1699_v8 }
 0x26e   : > { %v1520_v0 = vmax.f32 %v1501_v38, %v1509_v45  ;;  %1479 = vst.msk [vmem:[#allocation4 + $0x10] sm:$0xff] %vm1476_vm7, %v1470_v25  ;;  %v1368_v7 = vadd.f32 %v1350_v6, %v1283_v52  ;;  %v1435_v17 = vpop.f32.mrf.mxu3  ;;  %v1268_v18 = vpop.f32.mrf.mxu1  ;;  %v2078_v25 = vld [vmem:[%s3503_s4 + $0x70] sm:$0xff]  ;;  %v1757_v38 = vld [vmem:[%s3502_s3 + $0x138] sm:$0xff]  ;;  %v1116_v6 = vadd.f32 %v3101_v10, %v1031_v9 }
 0x26f   : > { %v1284_v2 = vadd.f32 %v1268_v18, %v1198_v21  ;;  %2082 = vmatpush.msrb.mxu0 %v2078_v25  ;;  %1783 = vmatpush.msrb.mxu2 %v1757_v38  ;;  %v1698_v10 = vld [vmem:[%s3502_s3 + $0xd0] sm:$0xff]  ;;  %v1754_v21 = vld [vmem:[%s3502_s3 + $0x120] sm:$0xff]  ;;  %v1920_v38 = vld [vmem:[%s3502_s3 + $0x1f8] sm:$0xff] }
 0x270   : > { %v1524_v61 = vmax.f32 %v1516_v57, %v1520_v0  ;;  %v1453_v60 = vadd.f32 %v1435_v17, %v1368_v7  ;;  %v1756_v57 = vld [vmem:[%s3502_s3 + $0x130] sm:$0xff]  ;;  %v1755_v0 = vld [vmem:[%s3502_s3 + $0x128] sm:$0xff]  ;;  %1734 = vmatpush.msrb.mxu1 %v1698_v10 }
 0x271   : > { %1784 = vmatpush.msrb.mxu2 %v1756_v57  ;;  %2083 = vmatpush.msrb.mxu0 %v2077_v13 }
 0x272   : > { %1530 = vst.msk [vmem:[#allocation5 + $0x9] sm:$0xf] %vm1529_vm8, %v1524_v61  ;;  %v1463_v22 = vadd.f32 %v3127_v50, %v1453_v60  ;;  %v1201_v61 = vadd.f32 %v3107_v23, %v1116_v6  ;;  %v1638_v23 = vld [vmem:[#allocation5 + $0x2] sm:$0xf]  ;;  %1735 = vmatpush.msrb.mxu1 %v1697_v11  ;;  %v1916_v11 = vld [vmem:[%s3502_s3 + $0x1d8] sm:$0xff] }
 0x273   : > { %1785 = vmatpush.msrb.mxu2 %v1755_v0  ;;  %v1860_v0 = vld [vmem:[%s3502_s3 + $0x188] sm:$0xff] }
 0x274   : > { %v1471_v47 = vmax.f32 %v1463_v22, 0.0 }
 0x275   : > { %v1353_v26 = vpop.f32.mrf.mxu2  ;;  %v1487_v48 = vld [vmem:[#allocation4 + $0x10] ss:$2 sm:$0xf]  ;;  %v1495_v3 = vld [vmem:[#allocation4 + $0x11] ss:$2 sm:$0xf]  ;;  %1786 = vmatpush.msrb.mxu2 %v1754_v21 }
 0x276   : > { %1480 = vst.msk [vmem:[#allocation4 + $0x18] sm:$0xff] %vm1476_vm7, %v1471_v47  ;;  %v1369_v62 = vadd.f32 %v1353_v26, %v1284_v2  ;;  %v1438_v12 = vpop.f32.mrf.mxu3  ;;  %v1271_v34 = vpop.f32.mrf.mxu1  ;;  %v1517_v58 = vmax.f32 %v1487_v48, %v1495_v3  ;;  %v1696_v2 = vld [vmem:[%s3502_s3 + $0xc0] sm:$0xff]  ;;  %v1752_v48 = vld [vmem:[%s3502_s3 + $0x110] sm:$0xff]  ;;  %v1974_v21 = vld [vmem:[%s3502_s3 + $0x238] sm:$0xff] }
 0x277   : > { %v1285_v31 = vadd.f32 %v1271_v34, %v1199_v28  ;;  %v1753_v28 = vld [vmem:[%s3502_s3 + $0x118] sm:$0xff]  ;;  %1736 = vmatpush.msrb.mxu1 %v1696_v2  ;;  %v1810_v3 = vld [vmem:[%s3502_s3 + $0x170] sm:$0xff]  ;;  %v1914_v2 = vld [vmem:[%s3502_s3 + $0x1c8] sm:$0xff] }
 0x278   : > { %v1454_v35 = vadd.f32 %v1438_v12, %v1369_v62  ;;  %1787 = vmatpush.msrb.mxu2 %v1753_v28  ;;  %v2075_v28 = vld [vmem:[%s3503_s4 + $0x58] sm:$0xff] }
 0x279   : > { %v1547_v42 = vld [vmem:[#allocation5 + $0x9] sm:$0xf] }
 0x27a   : > { %1564 = vst [vmem:[#allocation1 + $0x1] ss:$2 sm:$0xff] %v1547_v42  ;;  %v1464_v29 = vadd.f32 %v3127_v50, %v1454_v35  ;;  %v1535_v44 = vld [vmem:[#allocation5 + $0x8] sm:$0xf]  ;;  %1788 = vmatpush.msrb.mxu2 %v1752_v48 }
 0x27b   : > { %v1639_v60 = vld [vmem:[#allocation5 + $0xa] sm:$0xf] }
 0x27c   : > { %v1472_v33 = vmax.f32 %v1464_v29, 0.0  ;;  %v1811_v29 = vld [vmem:[%s3502_s3 + $0x178] sm:$0xff]  ;;  %v1746_v9 = vld [vmem:[#allocation5 + $0x9] sm:$0xf] }
 0x27d   : > { %v1503_v14 = vld [vmem:[#allocation4 + $0x18] ss:$2 sm:$0xf]  ;;  %v1511_v30 = vld [vmem:[#allocation4 + $0x19] ss:$2 sm:$0xf]  ;;  %v1356_v49 = vpop.f32.mrf.mxu2  ;;  %1837 = vmatpush.msra.mxu3 %v1811_v29 }
 0x27e   : > { %v1521_v37 = vmax.f32 %v1503_v14, %v1511_v30  ;;  %1481 = vst.msk [vmem:[#allocation4 + $0x20] sm:$0xff] %vm1476_vm7, %v1472_v33  ;;  %v1370_v15 = vadd.f32 %v1356_v49, %v1285_v31  ;;  %v1441_v36 = vpop.f32.mrf.mxu3  ;;  %v1274_v5 = vpop.f32.mrf.mxu1  ;;  %v1751_v14 = vld [vmem:[%s3502_s3 + $0x108] sm:$0xff]  ;;  %v1969_v48 = vld [vmem:[%s3502_s3 + $0x210] sm:$0xff] }
 0x27f   : > { %v1286_v54 = vadd.f32 %v1274_v5, %v1200_v39  ;;  %v1809_v30 = vld [vmem:[%s3502_s3 + $0x168] sm:$0xff]  ;;  %1838 = vmatpush.msra.mxu3 %v1810_v3  ;;  %1789 = vmatpush.msrb.mxu2 %v1751_v14  ;;  %v1866_v5 = vld [vmem:[%s3502_s3 + $0x1b8] sm:$0xff]  ;;  %v1863_v39 = vld [vmem:[%s3502_s3 + $0x1a0] sm:$0xff] }
 0x280   : > { %v1525_v43 = vmax.f32 %v1517_v58, %v1521_v37  ;;  %v1455_v32 = vadd.f32 %v1441_v36, %v1370_v15  ;;  %v1808_v58 = vld [vmem:[%s3502_s3 + $0x160] sm:$0xff]  ;;  %v1692_v15 = vld [vmem:[#allocation5 + $0x8] sm:$0xf]  ;;  %v1968_v3 = vld [vmem:[%s3502_s3 + $0x208] sm:$0xff] }
 0x281   : > { %v1569_v63 = vld.sshfl [vmem:[#allocation1] sm:$0xff pattern:$0x75316420]  ;;  %1839 = vmatpush.msra.mxu3 %v1809_v30  ;;  %1790 = vmatpush.msrb.mxu2 %v1750_v4 }
 0x282   : > { %1531 = vst.msk [vmem:[#allocation5 + $0x11] sm:$0xf] %vm1529_vm8, %v1525_v43  ;;  %v1465_v40 = vadd.f32 %v3127_v50, %v1455_v32  ;;  %2306 = vmatmul.msk.f32.vlgmr.msra.gmra.mxu1 %vm1476_vm7, %v1569_v63  ;;  %v1806_v43 = vld [vmem:[%s3502_s3 + $0x150] sm:$0xff]  ;;  %v1805_v63 = vld [vmem:[%s3502_s3 + $0x148] sm:$0xff]  ;;  %v1967_v14 = vld [vmem:[%s3502_s3 + $0x200] sm:$0xff] }
 0x283   : > { %1604 = vst [vmem:[#allocation1 + $0x1] ss:$2 sm:$0xff] %v1535_v44  ;;  %1840 = vmatpush.msra.mxu3 %v1808_v58  ;;  %1892 = vmatpush.msra.mxu1 %v1866_v5  ;;  %v1865_v32 = vld [vmem:[%s3502_s3 + $0x1b0] sm:$0xff] }
 0x284   : > { %v1473_v52 = vmax.f32 %v1465_v40, 0.0  ;;  %1602 = vst [vmem:[#allocation1] ss:$2 sm:$0xff] %v1534_v16  ;;  %v1864_v16 = vld [vmem:[%s3502_s3 + $0x1a8] sm:$0xff]  ;;  %v2074_v5 = vld [vmem:[%s3503_s4 + $0x50] sm:$0xff] }
 0x285   : > { %v1359_v45 = vpop.f32.mrf.mxu2  ;;  %v1489_v1 = vld [vmem:[#allocation4 + $0x20] ss:$2 sm:$0xf]  ;;  %v1497_v22 = vld [vmem:[#allocation4 + $0x21] ss:$2 sm:$0xf]  ;;  %1893 = vmatpush.msra.mxu1 %v1865_v32 }
 0x286   : > { %1482 = vst.msk [vmem:[#allocation4 + $0x28] sm:$0xff] %vm1476_vm7, %v1473_v52  ;;  %v1371_v56 = vadd.f32 %v1359_v45, %v1286_v54  ;;  %v1444_v53 = vpop.f32.mrf.mxu3  ;;  %v1277_v18 = vpop.f32.mrf.mxu1  ;;  %v1518_v12 = vmax.f32 %v1489_v1, %v1497_v22  ;;  %v1861_v45 = vld [vmem:[%s3502_s3 + $0x190] sm:$0xff]  ;;  %v1859_v1 = vld [vmem:[%s3502_s3 + $0x180] sm:$0xff] }
 0x287   : > { %v1287_v47 = vadd.f32 %v1277_v18, %v1201_v61  ;;  %1894 = vmatpush.msra.mxu1 %v1864_v16  ;;  %v1917_v18 = vld [vmem:[%s3502_s3 + $0x1e0] sm:$0xff] }
 0x288   : > { %v1456_v7 = vadd.f32 %v1444_v53, %v1371_v56  ;;  %v1919_v56 = vld [vmem:[%s3502_s3 + $0x1f0] sm:$0xff]  ;;  %v2076_v53 = vld [vmem:[%s3503_s4 + $0x60] sm:$0xff] }
 0x289   : > { %v1548_v17 = vld [vmem:[#allocation5 + $0x11] sm:$0xf]  ;;  %1895 = vmatpush.msra.mxu1 %v1863_v39  ;;  %2084 = vmatpush.msrb.mxu0 %v2076_v53  ;;  %v2068_v53 = vld [vmem:[%s3503_s4 + $0x20] sm:$0xff] }
 0x28a   : > { %1566 = vst [vmem:[#allocation1 + $0x10] ss:$2 sm:$0xff] %v1548_v17  ;;  %v1466_v19 = vadd.f32 %v3127_v50, %v1456_v7  ;;  %v1693_v59 = vld [vmem:[#allocation5 + $0x10] sm:$0xf]  ;;  %v1918_v7 = vld [vmem:[%s3502_s3 + $0x1e8] sm:$0xff] }
 0x28b   : > { %v1609_v24 = vld.sshfl [vmem:[#allocation1] sm:$0xff pattern:$0x75316420]  ;;  %1896 = vmatpush.msra.mxu1 %v1862_v55  ;;  %v1747_v57 = vld [vmem:[#allocation5 + $0x11] sm:$0xf]  ;;  %2085 = vmatpush.msrb.mxu0 %v2075_v28 }
 0x28c   : > { %v1474_v46 = vmax.f32 %v1466_v19, 0.0  ;;  %2308 = vmatmul.msk.f32.vlgmr.msra.gmra.mxu2 %vm1476_vm7, %v1609_v24  ;;  %1656 = vst [vmem:[#allocation1 + $0x1] ss:$2 sm:$0xff] %v1639_v60  ;;  %v1536_v17 = vld [vmem:[#allocation5 + $0x10] sm:$0xf] }
 0x28d   : > { %v1505_v26 = vld [vmem:[#allocation4 + $0x28] ss:$2 sm:$0xf]  ;;  %v1513_v27 = vld [vmem:[#allocation4 + $0x29] ss:$2 sm:$0xf]  ;;  %v1362_v62 = vpop.f32.mrf.mxu2  ;;  %1946 = vmatpush.msra.mxu2 %v1920_v38  ;;  %1897 = vmatpush.msra.mxu1 %v1861_v45 }
 0x28e   : > { %v1522_v34 = vmax.f32 %v1505_v26, %v1513_v27  ;;  %1483 = vst.msk [vmem:[#allocation4 + $0x30] sm:$0xff] %vm1476_vm7, %v1474_v46  ;;  %v1372_v35 = vadd.f32 %v1362_v62, %v1287_v47  ;;  %v1447_v42 = vpop.f32.mrf.mxu3  ;;  %v1800_v60 = vld [vmem:[#allocation5 + $0xa] sm:$0xf]  ;;  %v1801_v22 = vld [vmem:[#allocation5 + $0x12] sm:$0xf]  ;;  %v1972_v26 = vld [vmem:[%s3502_s3 + $0x228] sm:$0xff]  ;;  %2086 = vmatpush.msrb.mxu0 %v2074_v5 }
 0x28f   : > { %1654 = vst [vmem:[#allocation1] ss:$2 sm:$0xff] %v1638_v23  ;;  %1947 = vmatpush.msra.mxu2 %v1919_v56  ;;  %1898 = vmatpush.msra.mxu1 %v1860_v0  ;;  %v1640_v24 = vld [vmem:[#allocation5 + $0x12] sm:$0xf]  ;;  %v1915_v46 = vld [vmem:[%s3502_s3 + $0x1d0] sm:$0xff]  ;;  %v1913_v62 = vld [vmem:[%s3502_s3 + $0x1c0] sm:$0xff] }
 0x290   : > { %v1526_v33 = vmax.f32 %v1518_v12, %v1522_v34  ;;  %v1457_v31 = vadd.f32 %v1447_v42, %v1372_v35  ;;  %v1973_v47 = vld [vmem:[%s3502_s3 + $0x230] sm:$0xff]  ;;  %v1971_v12 = vld [vmem:[%s3502_s3 + $0x220] sm:$0xff]  ;;  %v1855_v34 = vld [vmem:[#allocation5 + $0x10] sm:$0xf] }
 0x291   : > { %1948 = vmatpush.msra.mxu2 %v1918_v7  ;;  %1899 = vmatpush.msra.mxu1 %v1859_v1  ;;  %v1970_v42 = vld [vmem:[%s3502_s3 + $0x218] sm:$0xff]  ;;  %v2069_v56 = vld [vmem:[%s3503_s4 + $0x28] sm:$0xff]  ;;  %v2066_v7 = vld [vmem:[%s3503_s4 + $0x10] sm:$0xff] }
 0x292   : > { %1532 = vst.msk [vmem:[#allocation5 + $0x19] sm:$0xf] %vm1529_vm8, %v1526_v33  ;;  %v1467_v49 = vadd.f32 %v3127_v50, %v1457_v31  ;;  %v1807_v50 = vld [vmem:[%s3502_s3 + $0x158] sm:$0xff] }
 0x293   : > { %1841 = vmatpush.msra.mxu3 %v1807_v50  ;;  %1949 = vmatpush.msra.mxu2 %v1917_v18  ;;  %v1963_v50 = vld [vmem:[#allocation5 + $0x12] sm:$0xf] }
 0x294   : > { %v1475_v37 = vmax.f32 %v1467_v49, 0.0  ;;  %v1909_v49 = vld [vmem:[#allocation5 + $0x11] sm:$0xf] }
 0x295   : > { %v1491_v20 = vld [vmem:[#allocation4 + $0x30] ss:$2 sm:$0xf]  ;;  %1842 = vmatpush.msra.mxu3 %v1806_v43  ;;  %v1499_v40 = vld [vmem:[#allocation4 + $0x31] ss:$2 sm:$0xf]  ;;  %1950 = vmatpush.msra.mxu2 %v1916_v11 }
 0x296   : > { %1484 = vst.msk [vmem:[#allocation4 + $0x38] sm:$0xff] %vm1476_vm7, %v1475_v37  ;;  %v1661_v36 = vld.sshfl [vmem:[#allocation1] sm:$0xff pattern:$0x75316420]  ;;  %v1519_v52 = vmax.f32 %v1491_v20, %v1499_v40  ;;  %v1858_v20 = vld [vmem:[#allocation5 + $0x28] sm:$0xf] }
 0x297   : > { %2310 = vmatmul.msk.f32.vlgmr.msrb.gmra.mxu3 %vm1476_vm7, %v1661_v36  ;;  %1708 = vst [vmem:[#allocation1] ss:$2 sm:$0xff] %v1692_v15  ;;  %1951 = vmatpush.msra.mxu2 %v1915_v46 }
 0x298   : > { %1710 = vst [vmem:[#allocation1 + $0x1] ss:$2 sm:$0xff] %v1693_v59  ;;  %1843 = vmatpush.msra.mxu3 %v1805_v63  ;;  %v2072_v63 = vld [vmem:[%s3503_s4 + $0x40] sm:$0xff] }
 0x299   : > { %v1549_v44 = vld [vmem:[#allocation5 + $0x19] sm:$0xf]  ;;  %1952 = vmatpush.msra.mxu2 %v1914_v2 }
 0x29a   : > { %1568 = vst [vmem:[#allocation1 + $0x11] ss:$2 sm:$0xff] %v1549_v44  ;;  %1844 = vmatpush.msra.mxu3 %v1804_v41  ;;  %v1537_v61 = vld [vmem:[#allocation5 + $0x18] sm:$0xf]  ;;  %v2073_v44 = vld [vmem:[%s3503_s4 + $0x48] sm:$0xff] }
 0x29b   : > { %v1641_v27 = vld [vmem:[#allocation5 + $0x1a] sm:$0xf]  ;;  %1953 = vmatpush.msra.mxu2 %v1913_v62  ;;  %2087 = vmatpush.msrb.mxu0 %v2073_v44  ;;  %v1912_v41 = vld [vmem:[#allocation5 + $0x29] sm:$0xf] }
 0x29c   : > { %2000 = vmatpush.msrb.mxu3 %v1974_v21  ;;  %v1856_v29 = vld [vmem:[#allocation5 + $0x18] sm:$0xf] }
 0x29d   : > { %v1507_v51 = vld [vmem:[#allocation4 + $0x38] ss:$2 sm:$0xf]  ;;  %v1515_v25 = vld [vmem:[#allocation4 + $0x39] ss:$2 sm:$0xf]  ;;  %2088 = vmatpush.msrb.mxu0 %v2072_v63 }
 0x29e   : > { %v1523_v54 = vmax.f32 %v1507_v51, %v1515_v25  ;;  %2001 = vmatpush.msrb.mxu3 %v1973_v47  ;;  %v1694_v33 = vld [vmem:[#allocation5 + $0x18] sm:$0xf] }
 0x29f   : > { %v1715_v6 = vld.sshfl [vmem:[#allocation1] sm:$0xff pattern:$0x75316420] }
 0x2a0   : > { %v1527_v8 = vmax.f32 %v1519_v52, %v1523_v54  ;;  %1762 = vst [vmem:[#allocation1] ss:$2 sm:$0xff] %v1746_v9  ;;  %2002 = vmatpush.msrb.mxu3 %v1972_v26  ;;  %v1910_v4 = vld [vmem:[#allocation5 + $0x19] sm:$0xf]  ;;  %v2071_v52 = vld [vmem:[%s3503_s4 + $0x38] sm:$0xff] }
 0x2a1   : > { %v1570_v10 = vld.sshfl [vmem:[#allocation1 + $0x10] sm:$0xff pattern:$0x75316420]  ;;  %1764 = vst [vmem:[#allocation1 + $0x1] ss:$2 sm:$0xff] %v1747_v57  ;;  %2089 = vmatpush.msrb.mxu0 %v2071_v52 }
 0x2a2   : > { %1533 = vst.msk [vmem:[#allocation5 + $0x21] sm:$0xf] %vm1529_vm8, %v1527_v8  ;;  %2307 = vmatmul.msk.f32.gmra.mxu1 %vm1476_vm7, %v1570_v10  ;;  %2003 = vmatpush.msrb.mxu3 %v1971_v12  ;;  %v1748_v37 = vld [vmem:[#allocation5 + $0x19] sm:$0xf]  ;;  %v1966_v54 = vld [vmem:[#allocation5 + $0x2a] sm:$0xf] }
 0x2a3   : > { %1606 = vst [vmem:[#allocation1 + $0x10] ss:$2 sm:$0xff] %v1536_v17  ;;  %v1964_v59 = vld [vmem:[#allocation5 + $0x1a] sm:$0xf]  ;;  %v2067_v8 = vld [vmem:[%s3503_s4 + $0x18] sm:$0xff] }
 0x2a4   : > { %1608 = vst [vmem:[#allocation1 + $0x11] ss:$2 sm:$0xff] %v1537_v61  ;;  %2004 = vmatpush.msrb.mxu3 %v1970_v42  ;;  %v1802_v32 = vld [vmem:[#allocation5 + $0x1a] sm:$0xf] }
 0x2a5   : > { %v2064_v12 = vld [vmem:[%s3503_s4] sm:$0xff] }
 0x2a6   : > { %2005 = vmatpush.msrb.mxu3 %v1969_v48  ;;  %v2376_v42 = vld [vmem:[%s3504_s5 + $0x2] ss:$0 sm:$0xff] }
 0x2a8   : > { %v1769_v19 = vld.sshfl [vmem:[#allocation1] sm:$0xff pattern:$0x75316420]  ;;  %2006 = vmatpush.msrb.mxu3 %v1968_v3 }
 0x2a9   : > { %1816 = vst [vmem:[#allocation1] ss:$2 sm:$0xff] %v1800_v60  ;;  %v1695_v31 = vld [vmem:[#allocation5 + $0x20] sm:$0xf] }
 0x2aa   : > { %2312 = vmatmul.msk.f32.vlgmr.msrb.gmra.mxu1 %vm1476_vm7, %v1715_v6  ;;  %1818 = vst [vmem:[#allocation1 + $0x1] ss:$2 sm:$0xff] %v1801_v22  ;;  %2007 = vmatpush.msrb.mxu3 %v1967_v14  ;;  %v1749_v15 = vld [vmem:[#allocation5 + $0x21] sm:$0xf]  ;;  %v2070_v6 = vld [vmem:[%s3503_s4 + $0x30] sm:$0xff] }
 0x2ab   : > { %v1610_v23 = vld.sshfl [vmem:[#allocation1 + $0x10] sm:$0xff pattern:$0x75316420]  ;;  %v1803_v16 = vld [vmem:[#allocation5 + $0x22] sm:$0xf]  ;;  %2090 = vmatpush.msrb.mxu0 %v2070_v6 }
 0x2ac   : > { %2309 = vmatmul.msk.f32.gmra.mxu2 %vm1476_vm7, %v1610_v23  ;;  %1658 = vst [vmem:[#allocation1 + $0x10] ss:$2 sm:$0xff] %v1640_v24  ;;  %v1857_v40 = vld [vmem:[#allocation5 + $0x20] sm:$0xf] }
 0x2ad   : > { %1660 = vst [vmem:[#allocation1 + $0x11] ss:$2 sm:$0xff] %v1641_v27  ;;  %v1911_v9 = vld [vmem:[#allocation5 + $0x21] sm:$0xf]  ;;  %2091 = vmatpush.msrb.mxu0 %v2069_v56 }
 0x2ae   : > { %v1965_v38 = vld [vmem:[#allocation5 + $0x22] sm:$0xf] }
 0x2af   : > { %2092 = vmatpush.msrb.mxu0 %v2068_v53 }
 0x2b1   : > { %v1823_v35 = vld.sshfl [vmem:[#allocation1] sm:$0xff pattern:$0x75316420]  ;;  %2093 = vmatpush.msrb.mxu0 %v2067_v8 }
 0x2b2   : > { %1871 = vst [vmem:[#allocation1] ss:$2 sm:$0xff] %v1855_v34 }
 0x2b3   : > { %1873 = vst [vmem:[#allocation1 + $0x1] ss:$2 sm:$0xff] %v1856_v29  ;;  %2094 = vmatpush.msrb.mxu0 %v2066_v7 }
 0x2b4   : > { %v1662_v13 = vld.sshfl [vmem:[#allocation1 + $0x10] sm:$0xff pattern:$0x75316420]  ;;  %2314 = vmatmul.msk.f32.vlgmr.msrb.gmra.mxu2 %vm1476_vm7, %v1769_v19  ;;  %v2065_v19 = vld [vmem:[%s3503_s4 + $0x8] sm:$0xff] }
 0x2b5   : > { %2311 = vmatmul.msk.f32.gmra.mxu3 %vm1476_vm7, %v1662_v13  ;;  %1712 = vst [vmem:[#allocation1 + $0x10] ss:$2 sm:$0xff] %v1694_v33  ;;  %2095 = vmatpush.msrb.mxu0 %v2065_v19 }
 0x2b6   : > { %1714 = vst [vmem:[#allocation1 + $0x11] ss:$2 sm:$0xff] %v1695_v31 }
 0x2b7   : > { %2096 = vmatpush.msrb.mxu0 %v2064_v12 }
 0x2ba   : > { %v1878_v30 = vld.sshfl [vmem:[#allocation1] sm:$0xff pattern:$0x75316420] }
 0x2bb   : > { %1925 = vst [vmem:[#allocation1] ss:$2 sm:$0xff] %v1909_v49 }
 0x2bc   : > { %1927 = vst [vmem:[#allocation1 + $0x1] ss:$2 sm:$0xff] %v1910_v4 }
 0x2bd   : > { %v1716_v58 = vld.sshfl [vmem:[#allocation1 + $0x10] sm:$0xff pattern:$0x75316420]  ;;  %2316 = vmatmul.msk.f32.vlgmr.msra.gmra.mxu3 %vm1476_vm7, %v1823_v35 }
 0x2be   : > { %2313 = vmatmul.msk.f32.gmra.mxu1 %vm1476_vm7, %v1716_v58  ;;  %1766 = vst [vmem:[#allocation1 + $0x10] ss:$2 sm:$0xff] %v1748_v37 }
 0x2bf   : > { %1768 = vst [vmem:[#allocation1 + $0x11] ss:$2 sm:$0xff] %v1749_v15 }
 0x2c3   : > { %v1932_v36 = vld.sshfl [vmem:[#allocation1] sm:$0xff pattern:$0x75316420] }
 0x2c4   : > { %1979 = vst [vmem:[#allocation1] ss:$2 sm:$0xff] %v1963_v50 }
 0x2c5   : > { %1981 = vst [vmem:[#allocation1 + $0x1] ss:$2 sm:$0xff] %v1964_v59 }
 0x2c6   : > { %v1770_v43 = vld.sshfl [vmem:[#allocation1 + $0x10] sm:$0xff pattern:$0x75316420]  ;;  %2318 = vmatmul.msk.f32.vlgmr.msra.gmra.mxu1 %vm1476_vm7, %v1878_v30 }
 0x2c7   : > { %2315 = vmatmul.msk.f32.gmra.mxu2 %vm1476_vm7, %v1770_v43  ;;  %1820 = vst [vmem:[#allocation1 + $0x10] ss:$2 sm:$0xff] %v1802_v32 }
 0x2c8   : > { %1822 = vst [vmem:[#allocation1 + $0x11] ss:$2 sm:$0xff] %v1803_v16 }
 0x2cc   : > { %v1986_v51 = vld.sshfl [vmem:[#allocation1] sm:$0xff pattern:$0x75316420] }
 0x2cf   : > { %v1824_v39 = vld.sshfl [vmem:[#allocation1 + $0x10] sm:$0xff pattern:$0x75316420]  ;;  %2320 = vmatmul.msk.f32.vlgmr.msra.gmra.mxu2 %vm1476_vm7, %v1932_v36 }
 0x2d0   : > { %2317 = vmatmul.msk.f32.gmra.mxu3 %vm1476_vm7, %v1824_v39  ;;  %1875 = vst [vmem:[#allocation1 + $0x10] ss:$2 sm:$0xff] %v1857_v40 }
 0x2d1   : > { %1877 = vst [vmem:[#allocation1 + $0x11] ss:$2 sm:$0xff] %v1858_v20 }
 0x2d8   : > { %v1879_v25 = vld.sshfl [vmem:[#allocation1 + $0x10] sm:$0xff pattern:$0x75316420]  ;;  %2322 = vmatmul.msk.f32.vlgmr.msrb.gmra.mxu3 %vm1476_vm7, %v1986_v51 }
 0x2d9   : > { %2319 = vmatmul.msk.f32.gmra.mxu1 %vm1476_vm7, %v1879_v25  ;;  %1929 = vst [vmem:[#allocation1 + $0x10] ss:$2 sm:$0xff] %v1911_v9 }
 0x2da   : > { %1931 = vst [vmem:[#allocation1 + $0x11] ss:$2 sm:$0xff] %v1912_v41 }
 0x2e1   : > { %v1933_v55 = vld.sshfl [vmem:[#allocation1 + $0x10] sm:$0xff pattern:$0x75316420] }
 0x2e2   : > { %2321 = vmatmul.msk.f32.gmra.mxu2 %vm1476_vm7, %v1933_v55  ;;  %1983 = vst [vmem:[#allocation1 + $0x10] ss:$2 sm:$0xff] %v1965_v38 }
 0x2e3   : > { %1985 = vst [vmem:[#allocation1 + $0x11] ss:$2 sm:$0xff] %v1966_v54 }
 0x2ea   : > { %v1987_v45 = vld.sshfl [vmem:[#allocation1 + $0x10] sm:$0xff pattern:$0x75316420] }
 0x2eb   : > { %2323 = vmatmul.msk.f32.gmra.mxu3 %vm1476_vm7, %v1987_v45 }
 0x2ff   : > { %v1592_v57 = vpop.f32.mrf.mxu1 }
 0x30f   : > { %v1632_v0 = vpop.f32.mrf.mxu2 }
 0x310   : > { %v1633_v22 = vadd.f32 %v1632_v0, %v1592_v57  ;;  %v2080_v57 = vld [vmem:[%s3504_s5 + $0x3] sm:$0x1] }
 0x31a   : > { %v1684_v10 = vpop.f32.mrf.mxu3 }
 0x31b   : > { %v1690_v46 = vadd.f32 %v1684_v10, %v1633_v22 }
 0x31f   : > { %v1595_v17 = vpop.f32.mrf.mxu1 }
 0x327   : > { %v1738_v61 = vpop.f32.mrf.mxu1 }
 0x328   : > { %v1744_v47 = vadd.f32 %v1738_v61, %v1690_v46 }
 0x32f   : > { %v1635_v1 = vpop.f32.mrf.mxu2 }
 0x330   : > { %v1636_v48 = vadd.f32 %v1635_v1, %v1595_v17 }
 0x337   : > { %v1792_v60 = vpop.f32.mrf.mxu2 }
 0x338   : > { %v1687_v18 = vpop.f32.mrf.mxu3  ;;  %v1798_v23 = vadd.f32 %v1792_v60, %v1744_v47 }
 0x339   : > { %v1691_v13 = vadd.f32 %v1687_v18, %v1636_v48 }
 0x33b   : > { %v1741_v11 = vpop.f32.mrf.mxu1 }
 0x33c   : > { %v1745_v14 = vadd.f32 %v1741_v11, %v1691_v13 }
 0x340   : > { %v1846_v21 = vpop.f32.mrf.mxu3 }
 0x341   : > { %v1852_v26 = vadd.f32 %v1846_v21, %v1798_v23 }
 0x343   : > { %v1901_v27 = vpop.f32.mrf.mxu1 }
 0x344   : > { %v1907_v34 = vadd.f32 %v1901_v27, %v1852_v26 }
 0x34a   : > { %v1795_v24 = vpop.f32.mrf.mxu2 }
 0x34b   : > { %v1799_v30 = vadd.f32 %v1795_v24, %v1745_v14 }
 0x352   : > { %v1955_v62 = vpop.f32.mrf.mxu2 }
 0x353   : > { %v1849_v2 = vpop.f32.mrf.mxu3  ;;  %v1961_v35 = vadd.f32 %v1955_v62, %v1907_v34 }
 0x354   : > { %v1853_v49 = vadd.f32 %v1849_v2, %v1799_v30 }
 0x356   : > { %v1904_v4 = vpop.f32.mrf.mxu1 }
 0x357   : > { %v1908_v37 = vadd.f32 %v1904_v4, %v1853_v49 }
 0x35b   : > { %v2009_v28 = vpop.f32.mrf.mxu3 }
 0x35c   : > { %v2015_v29 = vadd.f32 %v2009_v28, %v1961_v35 }
 0x35e   : > { %v2019_v3 = vadd.f32 %v2376_v42, %v2015_v29 }
 0x360   : > { %v2021_v33 = vmax.f32 %v2019_v3, 0.0 }
 0x362   : > { %v2025_v31 = vrot.slane %v2021_v33, 4  ;;  %2029 = vst [vmem:[#allocation6] sm:$0xf] %v2021_v33 }
 0x364   : > { %2030 = vst [vmem:[#allocation6 + $0x4] sm:$0xf] %v2025_v31 }
 0x365   : > { %v1958_v58 = vpop.f32.mrf.mxu2 }
 0x366   : > { %v1962_v15 = vadd.f32 %v1958_v58, %v1908_v37 }
 0x369   : > { %v2033_v16 = vld [vmem:[#allocation6] ss:$2 sm:$0x3]  ;;  %v2037_v44 = vld [vmem:[#allocation6 + $0x1] ss:$2 sm:$0x3] }
 0x36a   : > { %v2048_v39 = vmax.f32 %v2033_v16, %v2037_v44 }
 0x36b   : > { %v2041_v59 = vld [vmem:[#allocation6 + $0x4] ss:$2 sm:$0x3]  ;;  %v2045_v43 = vld [vmem:[#allocation6 + $0x5] ss:$2 sm:$0x3] }
 0x36c   : > { %v2050_v20 = vmax.f32 %v2041_v59, %v2045_v43 }
 0x36e   : > { %v2012_v36 = vpop.f32.mrf.mxu3  ;;  %v2052_v40 = vmax.f32 %v2048_v39, %v2050_v20 }
 0x36f   : > { %v2016_v50 = vadd.f32 %v2012_v36, %v1962_v15 }
 0x370   : > { %v2055_v25 = vrot.slane %v2052_v40, 1 }
 0x371   : > { %v2020_v5 = vadd.f32 %v2376_v42, %v2016_v50 }
 0x372   : > { %v2057_v45 = vadd.f32 %v2055_v25, %v2052_v40 }
 0x373   : > { %v2022_v32 = vmax.f32 %v2020_v5, 0.0 }
 0x375   : > { %v2026_v63 = vrot.slane %v2022_v32, 4  ;;  %2031 = vst [vmem:[#allocation6 + $0x8] sm:$0xf] %v2022_v32 }
 0x377   : > { %2032 = vst [vmem:[#allocation6 + $0xc] sm:$0xf] %v2026_v63 }
 0x37c   : > { %v2035_v41 = vld [vmem:[#allocation6 + $0x8] ss:$2 sm:$0x3]  ;;  %v2039_v51 = vld [vmem:[#allocation6 + $0x9] ss:$2 sm:$0x3] }
 0x37d   : > { %v2049_v54 = vmax.f32 %v2035_v41, %v2039_v51 }
 0x37e   : > { %v2043_v9 = vld [vmem:[#allocation6 + $0xc] ss:$2 sm:$0x3]  ;;  %v2047_v52 = vld [vmem:[#allocation6 + $0xd] ss:$2 sm:$0x3] }
 0x37f   : > { %v2051_v55 = vmax.f32 %v2043_v9, %v2047_v52 }
 0x381   : > { %v2053_v38 = vmax.f32 %v2049_v54, %v2051_v55 }
 0x383   : > { %v2058_v6 = vadd.f32 %v2057_v45, %v2053_v38  ;;  %v2060_v56 = vrot.slane %v2053_v38, 1 }
 0x385   : > { %v2062_v53 = vadd.f32 %v2060_v56, %v2058_v6 }
 0x387   : > { %v2063_v8 = vmul.f32 0.25, %v2062_v53 }
 0x389   : > { %2097 = vmatmul.f32.vlgmr.msrb.gmra.mxu0 %v2063_v8 }
 0x406   : > { %v2098_v0 = vpop.f32.mrf.mxu0 }
 0x407   : > { %v2099_v7 = vadd.f32 %v2098_v0, %v2080_v57 }
 0x409   : > { %2101 = vst [vmem:[%s244_s13] sm:$0x1] %v2099_v7 }
 0x40a   : > { %2404 = shalt.err (!%p2401_p3)
}
 0x40b   : > { %2334 = dma.vmem_to_hbm [thread:$0]  (%p2515_p5), %s2114_s14, 16, %s2116_s15, %s2103_s16  }
 0x40c PF: > { %p2340_p4 = scmp.ge.s32.totalorder %s2439_s24, 2  ;;  %s2127_s28 = sand.u32 1, %s2427_s21  }
 0x40d   : > { %s2128_s9 = scalar_lea.sflag [#allocation8], %s2127_s28 }
 0x40e   : > { %p2337_p7 = pnand %p2340_p4, %p2519_p6 }
 0x410   : > { %p2338_p8 = pneg %p2337_p7 }
 0x412   : > { %2422 = dma.done.wait (%p2338_p8), %s2128_s9, 16  }
 0x413   : > { %2424 = vsyncadd (%p2338_p8), %s2128_s9, 4294967280  ;;  %p16_p9 = scmp.ge.s32.totalorder %s2502_s27, 4   ;;  %s3508_s21 = smov %s2431_s22 }
 0x414   : > { %s3509_s22 = smov %s2435_s23  ;;  %s3510_s23 = smov %s2513_s30 }
 0x415   : > { %s3511_s24 = smov %s2502_s27  ;;  %18 = sbr.rel (!%p16_p9) target bundleno = 3 (0x3), region = 165 }
 0x41a   :  { %2133 = vsyncpa [#allocation8], 1 }
 0x41b   :  { %2135 = vsyncpa [#allocation8 + $0x1], 1 }

</bundles_post_ra>
